<compile_context>
chip_gen: v7x
topology: tpu7x:2x2x1
jax: 0.10.0
libtpu: 0.0.40
codegen_flags: <defaults>
</compile_context>

<pallas_src>
import jax
import jax.numpy as jnp
from jax import lax
from jax.experimental import pallas as pl
from jax.experimental.pallas import tpu as pltpu


def make_attention_kernel(heads: int, dim_head: int,
                          approx_softmax_recip: bool = False):
    inner = heads * dim_head

    def kernel(x_ref, wqkv_ref, wo_ref, bo_ref, o_ref):
        # x_ref   : (BB, N, C) f32 activation block
        # wqkv_ref: (C, 3*H*D) bf16 fused QKV weight (softmax scale folded in Q)
        # wo_ref  : (H*D, C)   bf16 output-projection weight
        # bo_ref  : (1, C)     f32 output-projection bias
        # o_ref   : (BB, N, C)
        bb, n, c = x_ref.shape

        # Cast activations to bf16 exactly once; all accumulation stays f32.
        x = x_ref[...].astype(jnp.bfloat16).reshape(bb * n, c)          # (BN, C)

        # --- ONE fused QKV projection (was 3*heads tiny matmuls) -------------
        qkv = jnp.dot(x, wqkv_ref[...],
                      preferred_element_type=jnp.float32)               # (BN, 3*H*D) f32

        # --- per-head attention ----------------------------------------------
        # Head split is a value-level column slice (cheap); heads stay a short
        # static loop only for the two attention dot_generals (see header note).
        ctx_heads = []
        for h in range(heads):
            lo = h * dim_head
            q = qkv[:, lo:lo + dim_head]
            k = qkv[:, inner + lo:inner + lo + dim_head]
            v = qkv[:, 2 * inner + lo:2 * inner + lo + dim_head]
            qb = q.astype(jnp.bfloat16).reshape(bb, n, dim_head)
            kb = k.astype(jnp.bfloat16).reshape(bb, n, dim_head)
            vb = v.astype(jnp.bfloat16).reshape(bb, n, dim_head)

            # Batched "nt" contraction over the leading batch dim; no k.T
            # is materialized.
            dots = lax.dot_general(qb, kb, (((2,), (2,)), ((0,), (0,))),
                                   preferred_element_type=jnp.float32)  # (BB, N, N)

            # Numerically-stable softmax, strictly f32.
            m = jnp.max(dots, axis=-1, keepdims=True)
            e = jnp.exp(dots - m)
            s = jnp.sum(e, axis=-1, keepdims=True)
            if approx_softmax_recip:
                # Production: EUP approx reciprocal (separate bundle slot).
                attn = e * pl.reciprocal(s, approx=True)
            else:
                # Validation: exact f32 divide (per correctness review).
                attn = e / s
            # TODO(synk): dropout is identity for the module default p=0.0;
            # no RNG / dropout mask is applied here.

            ctx = lax.dot_general(attn.astype(jnp.bfloat16), vb,
                                  (((2,), (1,)), ((0,), (0,))),
                                  preferred_element_type=jnp.float32)   # (BB, N, D)
            ctx_heads.append(ctx.astype(jnp.bfloat16))

        # 'b h n d -> b n (h d)' merge, then ONE output projection matmul.
        ctx_all = jnp.concatenate(ctx_heads, axis=-1).reshape(bb * n, inner)
        out = jnp.dot(ctx_all, wo_ref[...],
                      preferred_element_type=jnp.float32)               # (BN, C)
        out = out + bo_ref[...]                                         # (1, C) bias

        # C=32 (<128 lanes) makes this a masked store at toy sizes; at
        # production C>=128 it becomes lane-dense automatically.
        # TODO(synk): for C<128 deployments, present out as (B, N*C)
        # lane-dense slabs from the wrapper instead.
        o_ref[...] = out.reshape(bb, n, c).astype(o_ref.dtype)

    return kernel


def pack_attention_params(w_qkv, w_out, b_out, *, heads, dim_head):
    """One-time parameter repack (hoisted off the per-call path).

    Folds the 1/sqrt(dim_head) softmax scale into the Q columns (exact here:
    scale is a power of two for dim_head=16), casts weights to bf16 once
    (halving their HBM traffic), and reshapes the bias to (1, C).
    Call once and reuse the result across forward passes.
    """
    C = w_qkv.shape[0]
    inner = heads * dim_head
    assert w_qkv.shape == (C, 3 * inner)
    assert w_out.shape == (inner, C)
    scale = dim_head ** -0.5
    col_scale = jnp.concatenate([
        jnp.full((inner,), scale, dtype=w_qkv.dtype),
        jnp.ones((2 * inner,), dtype=w_qkv.dtype),
    ])
    w_qkv_p = (w_qkv * col_scale[None, :]).astype(jnp.bfloat16)   # (C, 3*H*D)
    w_out_p = w_out.astype(jnp.bfloat16)                          # (H*D, C)
    b_out_p = b_out.reshape(1, C).astype(jnp.float32)             # (1, C)
    return w_qkv_p, w_out_p, b_out_p


def _make_specs(batch_block, N, C, inner, single_buffer_weights):
    if single_buffer_weights:
        def wspec(shape):
            return pl.BlockSpec(shape, lambda i: (0,) * len(shape),
                                pipeline_mode=pl.Buffered(1))
    else:
        def wspec(shape):
            return pl.BlockSpec(shape, lambda i: (0,) * len(shape))
    in_specs = [
        pl.BlockSpec((batch_block, N, C), lambda i: (i, 0, 0)),  # x
        wspec((C, 3 * inner)),                                   # fused QKV weight
        wspec((inner, C)),                                       # output weight
        wspec((1, C)),                                           # output bias
    ]
    out_spec = pl.BlockSpec((batch_block, N, C), lambda i: (i, 0, 0))
    return in_specs, out_spec


def attention_forward(x, w_qkv_packed, w_out_packed, b_out_packed, *,
                      heads, dim_head, batch_block=None,
                      approx_softmax_recip=False):
    """x: (B, N, C) f32.  Packed params from pack_attention_params()."""
    B, N, C = x.shape
    inner = heads * dim_head
    assert w_qkv_packed.shape == (C, 3 * inner)
    assert w_out_packed.shape == (inner, C)
    assert b_out_packed.shape == (1, C)

    if batch_block is None:
        # >= 2 "parallel" grid steps by default so v7x's second TensorCore
        # gets work (megacore sharding); falls back to one step for B == 1.
        batch_block = B // 2 if (B >= 2 and B % 2 == 0) else B
    assert B % batch_block == 0
    nb = B // batch_block

    kernel = make_attention_kernel(heads, dim_head, approx_softmax_recip)

    def run(single_buffer_weights):
        in_specs, out_spec = _make_specs(batch_block, N, C, inner,
                                         single_buffer_weights)
        return pl.pallas_call(
            kernel,
            out_shape=jax.ShapeDtypeStruct((B, N, C), x.dtype),
            grid_spec=pltpu.PrefetchScalarGridSpec(
                num_scalar_prefetch=0,
                grid=(nb,),
                in_specs=in_specs,
                out_specs=out_spec,
            ),
            compiler_params=pltpu.CompilerParams(
                dimension_semantics=("parallel",),
                # Explicit scoped-VMEM ceiling (within physical VMEM on
                # v5e/v6e/v7x); matters for production-size tiles.
                vmem_limit_bytes=64 * 1024 * 1024,
            ),
        )(x, w_qkv_packed, w_out_packed, b_out_packed)

    try:
        # Grid-invariant weights: single-buffer them (their blocks never change,
        # so no pipelining is needed; halves their VMEM footprint).
        return run(single_buffer_weights=True)
    except Exception:
        # Fallback for Pallas builds that don't accept pipeline_mode on
        # pallas_call specs; default double-buffering only costs ~17 KiB here.
        return run(single_buffer_weights=False)


def attention_reference(x, w_qkv, w_out, b_out, *, heads, dim_head):
    """Pure-JAX f32 reference matching the PyTorch module semantics."""
    B, N, C = x.shape
    inner = heads * dim_head
    scale = dim_head ** -0.5
    qkv = x @ w_qkv
    q, k, v = jnp.split(qkv, 3, axis=-1)

    def to_heads(t):
        return t.reshape(B, N, heads, dim_head).transpose(0, 2, 1, 3)

    q, k, v = map(to_heads, (q, k, v))
    dots = jnp.einsum("bhnd,bhmd->bhnm", q, k) * scale
    attn = jax.nn.softmax(dots, axis=-1)
    out = jnp.einsum("bhnm,bhmd->bhnd", attn, v)
    out = out.transpose(0, 2, 1, 3).reshape(B, N, inner)
    return out @ w_out + b_out


def attention_reference_bf16(x, w_qkv, w_out, b_out, *, heads, dim_head):
    """Reference with the kernel's bf16-operand / f32-accumulate matmul
    quantization (softmax exact in f32) — used for a tighter correctness bound
    so the loose f32 tolerance cannot hide real bugs."""
    B, N, C = x.shape
    inner = heads * dim_head
    scale = dim_head ** -0.5
    bf, f32 = jnp.bfloat16, jnp.float32
    qkv = jnp.dot(x.astype(bf), w_qkv.astype(bf), preferred_element_type=f32)
    q, k, v = jnp.split(qkv, 3, axis=-1)

    def to_heads(t):
        return t.reshape(B, N, heads, dim_head).transpose(0, 2, 1, 3)

    q, k, v = map(to_heads, (q, k, v))
    dots = jnp.einsum("bhnd,bhmd->bhnm", q.astype(bf), k.astype(bf),
                      preferred_element_type=f32) * scale
    attn = jax.nn.softmax(dots, axis=-1)
    out = jnp.einsum("bhnm,bhmd->bhnd", attn.astype(bf), v.astype(bf),
                     preferred_element_type=f32)
    out = out.transpose(0, 2, 1, 3).reshape(B, N, inner)
    out = jnp.dot(out.astype(bf), w_out.astype(bf), preferred_element_type=f32)
    return out + b_out


if __name__ == "__main__":
    # Small, module-consistent shapes.
    B, N, dim = 2, 8, 32
    heads, dim_head = 4, 16
    inner = heads * dim_head

    key = jax.random.PRNGKey(0)
    kx, kq, ko, kb = jax.random.split(key, 4)

    x = jax.random.normal(kx, (B, N, dim), dtype=jnp.float32)
    # Deterministic parameter init (synthetic; shapes match nn.Linear weights^T).
    w_qkv = jax.random.normal(kq, (dim, 3 * inner), dtype=jnp.float32) * (dim ** -0.5)
    w_out = jax.random.normal(ko, (inner, dim), dtype=jnp.float32) * (inner ** -0.5)
    b_out = jax.random.normal(kb, (dim,), dtype=jnp.float32) * 0.01

    # One-time weight repack, hoisted off the per-call path.
    packed = pack_attention_params(w_qkv, w_out, b_out,
                                   heads=heads, dim_head=dim_head)
    packed = jax.block_until_ready(packed)

    out = attention_forward(x, *packed, heads=heads, dim_head=dim_head)
    out = jax.block_until_ready(out)
    assert out.shape == (B, N, dim)

    # Tight check vs a bf16-matmul-consistent reference (exact softmax), and a
    # looser bf16-appropriate check vs the pure-f32 reference.
    ref_bf16 = attention_reference_bf16(x, w_qkv, w_out, b_out,
                                        heads=heads, dim_head=dim_head)
    ref_f32 = attention_reference(x, w_qkv, w_out, b_out,
                                  heads=heads, dim_head=dim_head)
    assert jnp.allclose(out, ref_bf16, rtol=1e-2, atol=1e-2), \
        "mismatch vs bf16-matmul reference"
    assert jnp.allclose(out, ref_f32, rtol=5e-2, atol=5e-2), \
        "mismatch vs f32 reference"

    print("KERNEL_OK")
</pallas_src>

<mosaic_0001>
module attributes {stable_mosaic.version = 11 : i64} {
  func.func @kernel(%arg0: i32, %arg1: memref<1x8x32xf32, #tpu.memory_space<vmem>>, %arg2: memref<32x192xbf16, #tpu.memory_space<vmem>>, %arg3: memref<64x32xbf16, #tpu.memory_space<vmem>>, %arg4: memref<1x32xf32, #tpu.memory_space<vmem>>, %arg5: memref<1x8x32xf32, #tpu.memory_space<vmem>>) attributes {dimension_semantics = [#tpu.dimension_semantics<parallel>], iteration_bounds = array<i64: 2>, scalar_prefetch = 0 : i64, scratch_operands = 0 : i64, tpu.core_type = #tpu.core_type<tc>, window_params = [{transform_indices = @transform_0, window_bounds = array<i64: 1, 8, 32>}, {pipeline_mode = #tpu.pipeline_mode<synchronous>, transform_indices = @transform_1, window_bounds = array<i64: 32, 192>}, {pipeline_mode = #tpu.pipeline_mode<synchronous>, transform_indices = @transform_2, window_bounds = array<i64: 64, 32>}, {pipeline_mode = #tpu.pipeline_mode<synchronous>, transform_indices = @transform_3, window_bounds = array<i64: 1, 32>}, {transform_indices = @transform_4, window_bounds = array<i64: 1, 8, 32>}]} {
    %c0 = arith.constant 0 : index
    %c0_0 = arith.constant 0 : index
    %c0_1 = arith.constant 0 : index
    %0 = vector.load %arg1[%c0, %c0_0, %c0_1] : memref<1x8x32xf32, #tpu.memory_space<vmem>>, vector<1x8x32xf32>
    %1 = arith.truncf %0 : vector<1x8x32xf32> to vector<1x8x32xbf16>
    %2 = vector.shape_cast %1 : vector<1x8x32xbf16> to vector<8x32xbf16>
    %c0_2 = arith.constant 0 : index
    %c0_3 = arith.constant 0 : index
    %3 = vector.load %arg2[%c0_2, %c0_3] : memref<32x192xbf16, #tpu.memory_space<vmem>>, vector<32x192xbf16>
    %cst = arith.constant dense<0.000000e+00> : vector<8x192xf32>
    %4 = tpu.matmul %2, %3, %cst {dimension_numbers = #tpu.dot_dimension_numbers<[1], [0], [0], [1], [0, 0, 1, 1], [], []>} : vector<8x32xbf16>, vector<32x192xbf16>, vector<8x192xf32> -> vector<8x192xf32>
    %5 = vector.extract_strided_slice %4 {offsets = [0, 0], sizes = [8, 16], strides = [1, 1]} : vector<8x192xf32> to vector<8x16xf32>
    %6 = vector.extract_strided_slice %4 {offsets = [0, 64], sizes = [8, 16], strides = [1, 1]} : vector<8x192xf32> to vector<8x16xf32>
    %7 = vector.extract_strided_slice %4 {offsets = [0, 128], sizes = [8, 16], strides = [1, 1]} : vector<8x192xf32> to vector<8x16xf32>
    %8 = arith.truncf %5 : vector<8x16xf32> to vector<8x16xbf16>
    %9 = vector.shape_cast %8 : vector<8x16xbf16> to vector<1x8x16xbf16>
    %10 = arith.truncf %6 : vector<8x16xf32> to vector<8x16xbf16>
    %11 = vector.shape_cast %10 : vector<8x16xbf16> to vector<1x8x16xbf16>
    %12 = arith.truncf %7 : vector<8x16xf32> to vector<8x16xbf16>
    %13 = vector.shape_cast %12 : vector<8x16xbf16> to vector<1x8x16xbf16>
    %cst_4 = arith.constant dense<0.000000e+00> : vector<1x8x8xf32>
    %14 = tpu.matmul %9, %11, %cst_4 {dimension_numbers = #tpu.dot_dimension_numbers<[2], [2], [1], [1], [0, 0, 0, 1, 1, 1], [0], [0]>} : vector<1x8x16xbf16>, vector<1x8x16xbf16>, vector<1x8x8xf32> -> vector<1x8x8xf32>
    %cst_5 = arith.constant dense<0xFF800000> : vector<1x8xf32>
    %15 = vector.multi_reduction <maximumf>, %14, %cst_5 [2] : vector<1x8x8xf32> to vector<1x8xf32>
    %16 = vector.shape_cast %15 : vector<1x8xf32> to vector<1x8x1xf32>
    %17 = vector.broadcast %16 : vector<1x8x1xf32> to vector<1x8x8xf32>
    %18 = arith.subf %14, %17 : vector<1x8x8xf32>
    %19 = math.exp %18 : vector<1x8x8xf32>
    %cst_6 = arith.constant dense<0.000000e+00> : vector<1x8xf32>
    %20 = vector.multi_reduction <add>, %19, %cst_6 [2] : vector<1x8x8xf32> to vector<1x8xf32>
    %21 = vector.shape_cast %20 : vector<1x8xf32> to vector<1x8x1xf32>
    %22 = vector.broadcast %21 : vector<1x8x1xf32> to vector<1x8x8xf32>
    %23 = arith.divf %19, %22 : vector<1x8x8xf32>
    %24 = arith.truncf %23 : vector<1x8x8xf32> to vector<1x8x8xbf16>
    %cst_7 = arith.constant dense<0.000000e+00> : vector<1x8x16xf32>
    %25 = tpu.matmul %24, %13, %cst_7 {dimension_numbers = #tpu.dot_dimension_numbers<[2], [1], [1], [2], [0, 0, 0, 1, 1, 2], [0], [0]>} : vector<1x8x8xbf16>, vector<1x8x16xbf16>, vector<1x8x16xf32> -> vector<1x8x16xf32>
    %26 = arith.truncf %25 : vector<1x8x16xf32> to vector<1x8x16xbf16>
    %27 = vector.extract_strided_slice %4 {offsets = [0, 16], sizes = [8, 16], strides = [1, 1]} : vector<8x192xf32> to vector<8x16xf32>
    %28 = vector.extract_strided_slice %4 {offsets = [0, 80], sizes = [8, 16], strides = [1, 1]} : vector<8x192xf32> to vector<8x16xf32>
    %29 = vector.extract_strided_slice %4 {offsets = [0, 144], sizes = [8, 16], strides = [1, 1]} : vector<8x192xf32> to vector<8x16xf32>
    %30 = arith.truncf %27 : vector<8x16xf32> to vector<8x16xbf16>
    %31 = vector.shape_cast %30 : vector<8x16xbf16> to vector<1x8x16xbf16>
    %32 = arith.truncf %28 : vector<8x16xf32> to vector<8x16xbf16>
    %33 = vector.shape_cast %32 : vector<8x16xbf16> to vector<1x8x16xbf16>
    %34 = arith.truncf %29 : vector<8x16xf32> to vector<8x16xbf16>
    %35 = vector.shape_cast %34 : vector<8x16xbf16> to vector<1x8x16xbf16>
    %cst_8 = arith.constant dense<0.000000e+00> : vector<1x8x8xf32>
    %36 = tpu.matmul %31, %33, %cst_8 {dimension_numbers = #tpu.dot_dimension_numbers<[2], [2], [1], [1], [0, 0, 0, 1, 1, 1], [0], [0]>} : vector<1x8x16xbf16>, vector<1x8x16xbf16>, vector<1x8x8xf32> -> vector<1x8x8xf32>
    %cst_9 = arith.constant dense<0xFF800000> : vector<1x8xf32>
    %37 = vector.multi_reduction <maximumf>, %36, %cst_9 [2] : vector<1x8x8xf32> to vector<1x8xf32>
    %38 = vector.shape_cast %37 : vector<1x8xf32> to vector<1x8x1xf32>
    %39 = vector.broadcast %38 : vector<1x8x1xf32> to vector<1x8x8xf32>
    %40 = arith.subf %36, %39 : vector<1x8x8xf32>
    %41 = math.exp %40 : vector<1x8x8xf32>
    %cst_10 = arith.constant dense<0.000000e+00> : vector<1x8xf32>
    %42 = vector.multi_reduction <add>, %41, %cst_10 [2] : vector<1x8x8xf32> to vector<1x8xf32>
    %43 = vector.shape_cast %42 : vector<1x8xf32> to vector<1x8x1xf32>
    %44 = vector.broadcast %43 : vector<1x8x1xf32> to vector<1x8x8xf32>
    %45 = arith.divf %41, %44 : vector<1x8x8xf32>
    %46 = arith.truncf %45 : vector<1x8x8xf32> to vector<1x8x8xbf16>
    %cst_11 = arith.constant dense<0.000000e+00> : vector<1x8x16xf32>
    %47 = tpu.matmul %46, %35, %cst_11 {dimension_numbers = #tpu.dot_dimension_numbers<[2], [1], [1], [2], [0, 0, 0, 1, 1, 2], [0], [0]>} : vector<1x8x8xbf16>, vector<1x8x16xbf16>, vector<1x8x16xf32> -> vector<1x8x16xf32>
    %48 = arith.truncf %47 : vector<1x8x16xf32> to vector<1x8x16xbf16>
    %49 = vector.extract_strided_slice %4 {offsets = [0, 32], sizes = [8, 16], strides = [1, 1]} : vector<8x192xf32> to vector<8x16xf32>
    %50 = vector.extract_strided_slice %4 {offsets = [0, 96], sizes = [8, 16], strides = [1, 1]} : vector<8x192xf32> to vector<8x16xf32>
    %51 = vector.extract_strided_slice %4 {offsets = [0, 160], sizes = [8, 16], strides = [1, 1]} : vector<8x192xf32> to vector<8x16xf32>
    %52 = arith.truncf %49 : vector<8x16xf32> to vector<8x16xbf16>
    %53 = vector.shape_cast %52 : vector<8x16xbf16> to vector<1x8x16xbf16>
    %54 = arith.truncf %50 : vector<8x16xf32> to vector<8x16xbf16>
    %55 = vector.shape_cast %54 : vector<8x16xbf16> to vector<1x8x16xbf16>
    %56 = arith.truncf %51 : vector<8x16xf32> to vector<8x16xbf16>
    %57 = vector.shape_cast %56 : vector<8x16xbf16> to vector<1x8x16xbf16>
    %cst_12 = arith.constant dense<0.000000e+00> : vector<1x8x8xf32>
    %58 = tpu.matmul %53, %55, %cst_12 {dimension_numbers = #tpu.dot_dimension_numbers<[2], [2], [1], [1], [0, 0, 0, 1, 1, 1], [0], [0]>} : vector<1x8x16xbf16>, vector<1x8x16xbf16>, vector<1x8x8xf32> -> vector<1x8x8xf32>
    %cst_13 = arith.constant dense<0xFF800000> : vector<1x8xf32>
    %59 = vector.multi_reduction <maximumf>, %58, %cst_13 [2] : vector<1x8x8xf32> to vector<1x8xf32>
    %60 = vector.shape_cast %59 : vector<1x8xf32> to vector<1x8x1xf32>
    %61 = vector.broadcast %60 : vector<1x8x1xf32> to vector<1x8x8xf32>
    %62 = arith.subf %58, %61 : vector<1x8x8xf32>
    %63 = math.exp %62 : vector<1x8x8xf32>
    %cst_14 = arith.constant dense<0.000000e+00> : vector<1x8xf32>
    %64 = vector.multi_reduction <add>, %63, %cst_14 [2] : vector<1x8x8xf32> to vector<1x8xf32>
    %65 = vector.shape_cast %64 : vector<1x8xf32> to vector<1x8x1xf32>
    %66 = vector.broadcast %65 : vector<1x8x1xf32> to vector<1x8x8xf32>
    %67 = arith.divf %63, %66 : vector<1x8x8xf32>
    %68 = arith.truncf %67 : vector<1x8x8xf32> to vector<1x8x8xbf16>
    %cst_15 = arith.constant dense<0.000000e+00> : vector<1x8x16xf32>
    %69 = tpu.matmul %68, %57, %cst_15 {dimension_numbers = #tpu.dot_dimension_numbers<[2], [1], [1], [2], [0, 0, 0, 1, 1, 2], [0], [0]>} : vector<1x8x8xbf16>, vector<1x8x16xbf16>, vector<1x8x16xf32> -> vector<1x8x16xf32>
    %70 = arith.truncf %69 : vector<1x8x16xf32> to vector<1x8x16xbf16>
    %71 = vector.extract_strided_slice %4 {offsets = [0, 48], sizes = [8, 16], strides = [1, 1]} : vector<8x192xf32> to vector<8x16xf32>
    %72 = vector.extract_strided_slice %4 {offsets = [0, 112], sizes = [8, 16], strides = [1, 1]} : vector<8x192xf32> to vector<8x16xf32>
    %73 = vector.extract_strided_slice %4 {offsets = [0, 176], sizes = [8, 16], strides = [1, 1]} : vector<8x192xf32> to vector<8x16xf32>
    %74 = arith.truncf %71 : vector<8x16xf32> to vector<8x16xbf16>
    %75 = vector.shape_cast %74 : vector<8x16xbf16> to vector<1x8x16xbf16>
    %76 = arith.truncf %72 : vector<8x16xf32> to vector<8x16xbf16>
    %77 = vector.shape_cast %76 : vector<8x16xbf16> to vector<1x8x16xbf16>
    %78 = arith.truncf %73 : vector<8x16xf32> to vector<8x16xbf16>
    %79 = vector.shape_cast %78 : vector<8x16xbf16> to vector<1x8x16xbf16>
    %cst_16 = arith.constant dense<0.000000e+00> : vector<1x8x8xf32>
    %80 = tpu.matmul %75, %77, %cst_16 {dimension_numbers = #tpu.dot_dimension_numbers<[2], [2], [1], [1], [0, 0, 0, 1, 1, 1], [0], [0]>} : vector<1x8x16xbf16>, vector<1x8x16xbf16>, vector<1x8x8xf32> -> vector<1x8x8xf32>
    %cst_17 = arith.constant dense<0xFF800000> : vector<1x8xf32>
    %81 = vector.multi_reduction <maximumf>, %80, %cst_17 [2] : vector<1x8x8xf32> to vector<1x8xf32>
    %82 = vector.shape_cast %81 : vector<1x8xf32> to vector<1x8x1xf32>
    %83 = vector.broadcast %82 : vector<1x8x1xf32> to vector<1x8x8xf32>
    %84 = arith.subf %80, %83 : vector<1x8x8xf32>
    %85 = math.exp %84 : vector<1x8x8xf32>
    %cst_18 = arith.constant dense<0.000000e+00> : vector<1x8xf32>
    %86 = vector.multi_reduction <add>, %85, %cst_18 [2] : vector<1x8x8xf32> to vector<1x8xf32>
    %87 = vector.shape_cast %86 : vector<1x8xf32> to vector<1x8x1xf32>
    %88 = vector.broadcast %87 : vector<1x8x1xf32> to vector<1x8x8xf32>
    %89 = arith.divf %85, %88 : vector<1x8x8xf32>
    %90 = arith.truncf %89 : vector<1x8x8xf32> to vector<1x8x8xbf16>
    %cst_19 = arith.constant dense<0.000000e+00> : vector<1x8x16xf32>
    %91 = tpu.matmul %90, %79, %cst_19 {dimension_numbers = #tpu.dot_dimension_numbers<[2], [1], [1], [2], [0, 0, 0, 1, 1, 2], [0], [0]>} : vector<1x8x8xbf16>, vector<1x8x16xbf16>, vector<1x8x16xf32> -> vector<1x8x16xf32>
    %92 = arith.truncf %91 : vector<1x8x16xf32> to vector<1x8x16xbf16>
    %93 = tpu.concatenate %26, %48, %70, %92 in 2 : vector<1x8x16xbf16>, vector<1x8x16xbf16>, vector<1x8x16xbf16>, vector<1x8x16xbf16> -> vector<1x8x64xbf16>
    %94 = vector.shape_cast %93 : vector<1x8x64xbf16> to vector<8x64xbf16>
    %c0_20 = arith.constant 0 : index
    %c0_21 = arith.constant 0 : index
    %95 = vector.load %arg3[%c0_20, %c0_21] : memref<64x32xbf16, #tpu.memory_space<vmem>>, vector<64x32xbf16>
    %cst_22 = arith.constant dense<0.000000e+00> : vector<8x32xf32>
    %96 = tpu.matmul %94, %95, %cst_22 {dimension_numbers = #tpu.dot_dimension_numbers<[1], [0], [0], [1], [0, 0, 1, 1], [], []>} : vector<8x64xbf16>, vector<64x32xbf16>, vector<8x32xf32> -> vector<8x32xf32>
    %c0_23 = arith.constant 0 : index
    %c0_24 = arith.constant 0 : index
    %97 = vector.load %arg4[%c0_23, %c0_24] : memref<1x32xf32, #tpu.memory_space<vmem>>, vector<1x32xf32>
    %98 = vector.broadcast %97 : vector<1x32xf32> to vector<8x32xf32>
    %99 = arith.addf %96, %98 : vector<8x32xf32>
    %100 = vector.shape_cast %99 : vector<8x32xf32> to vector<1x8x32xf32>
    %c0_25 = arith.constant 0 : index
    %c0_26 = arith.constant 0 : index
    %c0_27 = arith.constant 0 : index
    %101 = vector.load %arg5[%c0_25, %c0_26, %c0_27] : memref<1x8x32xf32, #tpu.memory_space<vmem>>, vector<1x8x32xf32>
    tpu.vector_store %arg5[%c0_25, %c0_26, %c0_27], %100 {strides = array<i32>} : memref<1x8x32xf32, #tpu.memory_space<vmem>>, vector<1x8x32xf32>,
    return
  }
  func.func @transform_0(%arg0: i32) -> (i32, i32, i32) {
    %c0_i32 = arith.constant 0 : i32
    %c0_i32_0 = arith.constant 0 : i32
    %c0_i32_1 = arith.constant 0 : i32
    return %arg0, %c0_i32, %c0_i32_0 : i32, i32, i32
  }
  func.func @transform_1(%arg0: i32) -> (i32, i32) {
    %c0_i32 = arith.constant 0 : i32
    %c0_i32_0 = arith.constant 0 : i32
    %c0_i32_1 = arith.constant 0 : i32
    return %c0_i32, %c0_i32_0 : i32, i32
  }
  func.func @transform_2(%arg0: i32) -> (i32, i32) {
    %c0_i32 = arith.constant 0 : i32
    %c0_i32_0 = arith.constant 0 : i32
    %c0_i32_1 = arith.constant 0 : i32
    return %c0_i32, %c0_i32_0 : i32, i32
  }
  func.func @transform_3(%arg0: i32) -> (i32, i32) {
    %c0_i32 = arith.constant 0 : i32
    %c0_i32_0 = arith.constant 0 : i32
    %c0_i32_1 = arith.constant 0 : i32
    return %c0_i32, %c0_i32_0 : i32, i32
  }
  func.func @transform_4(%arg0: i32) -> (i32, i32, i32) {
    %c0_i32 = arith.constant 0 : i32
    %c0_i32_0 = arith.constant 0 : i32
    %c0_i32_1 = arith.constant 0 : i32
    return %arg0, %c0_i32, %c0_i32_0 : i32, i32, i32
  }
}

module attributes {stable_mosaic.version = 11 : i64} {
  func.func @kernel(%arg0: i32, %arg1: memref<1x8x32xf32, #tpu.memory_space<vmem>>, %arg2: memref<32x192xbf16, #tpu.memory_space<vmem>>, %arg3: memref<64x32xbf16, #tpu.memory_space<vmem>>, %arg4: memref<1x32xf32, #tpu.memory_space<vmem>>, %arg5: memref<1x8x32xf32, #tpu.memory_space<vmem>>) attributes {dimension_semantics = [#tpu.dimension_semantics<parallel>], iteration_bounds = array<i64: 2>, scalar_prefetch = 0 : i64, scratch_operands = 0 : i64, tpu.core_type = #tpu.core_type<tc>, window_params = [{transform_indices = @transform_0, window_bounds = array<i64: 1, 8, 32>}, {pipeline_mode = #tpu.pipeline_mode<synchronous>, transform_indices = @transform_1, window_bounds = array<i64: 32, 192>}, {pipeline_mode = #tpu.pipeline_mode<synchronous>, transform_indices = @transform_2, window_bounds = array<i64: 64, 32>}, {pipeline_mode = #tpu.pipeline_mode<synchronous>, transform_indices = @transform_3, window_bounds = array<i64: 1, 32>}, {transform_indices = @transform_4, window_bounds = array<i64: 1, 8, 32>}]} {
    %c0 = arith.constant 0 : index
    %c0_0 = arith.constant 0 : index
    %c0_1 = arith.constant 0 : index
    %0 = vector.load %arg1[%c0, %c0_0, %c0_1] : memref<1x8x32xf32, #tpu.memory_space<vmem>>, vector<1x8x32xf32>
    %1 = arith.truncf %0 : vector<1x8x32xf32> to vector<1x8x32xbf16>
    %2 = vector.shape_cast %1 : vector<1x8x32xbf16> to vector<8x32xbf16>
    %c0_2 = arith.constant 0 : index
    %c0_3 = arith.constant 0 : index
    %3 = vector.load %arg2[%c0_2, %c0_3] : memref<32x192xbf16, #tpu.memory_space<vmem>>, vector<32x192xbf16>
    %cst = arith.constant dense<0.000000e+00> : vector<8x192xf32>
    %4 = tpu.matmul %2, %3, %cst {dimension_numbers = #tpu.dot_dimension_numbers<[1], [0], [0], [1], [0, 0, 1, 1], [], []>} : vector<8x32xbf16>, vector<32x192xbf16>, vector<8x192xf32> -> vector<8x192xf32>
    %5 = vector.extract_strided_slice %4 {offsets = [0, 0], sizes = [8, 16], strides = [1, 1]} : vector<8x192xf32> to vector<8x16xf32>
    %6 = vector.extract_strided_slice %4 {offsets = [0, 64], sizes = [8, 16], strides = [1, 1]} : vector<8x192xf32> to vector<8x16xf32>
    %7 = vector.extract_strided_slice %4 {offsets = [0, 128], sizes = [8, 16], strides = [1, 1]} : vector<8x192xf32> to vector<8x16xf32>
    %8 = arith.truncf %5 : vector<8x16xf32> to vector<8x16xbf16>
    %9 = vector.shape_cast %8 : vector<8x16xbf16> to vector<1x8x16xbf16>
    %10 = arith.truncf %6 : vector<8x16xf32> to vector<8x16xbf16>
    %11 = vector.shape_cast %10 : vector<8x16xbf16> to vector<1x8x16xbf16>
    %12 = arith.truncf %7 : vector<8x16xf32> to vector<8x16xbf16>
    %13 = vector.shape_cast %12 : vector<8x16xbf16> to vector<1x8x16xbf16>
    %cst_4 = arith.constant dense<0.000000e+00> : vector<1x8x8xf32>
    %14 = tpu.matmul %9, %11, %cst_4 {dimension_numbers = #tpu.dot_dimension_numbers<[2], [2], [1], [1], [0, 0, 0, 1, 1, 1], [0], [0]>} : vector<1x8x16xbf16>, vector<1x8x16xbf16>, vector<1x8x8xf32> -> vector<1x8x8xf32>
    %cst_5 = arith.constant dense<0xFF800000> : vector<1x8xf32>
    %15 = vector.multi_reduction <maximumf>, %14, %cst_5 [2] : vector<1x8x8xf32> to vector<1x8xf32>
    %16 = vector.shape_cast %15 : vector<1x8xf32> to vector<1x8x1xf32>
    %17 = vector.broadcast %16 : vector<1x8x1xf32> to vector<1x8x8xf32>
    %18 = arith.subf %14, %17 : vector<1x8x8xf32>
    %19 = math.exp %18 : vector<1x8x8xf32>
    %cst_6 = arith.constant dense<0.000000e+00> : vector<1x8xf32>
    %20 = vector.multi_reduction <add>, %19, %cst_6 [2] : vector<1x8x8xf32> to vector<1x8xf32>
    %21 = vector.shape_cast %20 : vector<1x8xf32> to vector<1x8x1xf32>
    %22 = vector.broadcast %21 : vector<1x8x1xf32> to vector<1x8x8xf32>
    %23 = arith.divf %19, %22 : vector<1x8x8xf32>
    %24 = arith.truncf %23 : vector<1x8x8xf32> to vector<1x8x8xbf16>
    %cst_7 = arith.constant dense<0.000000e+00> : vector<1x8x16xf32>
    %25 = tpu.matmul %24, %13, %cst_7 {dimension_numbers = #tpu.dot_dimension_numbers<[2], [1], [1], [2], [0, 0, 0, 1, 1, 2], [0], [0]>} : vector<1x8x8xbf16>, vector<1x8x16xbf16>, vector<1x8x16xf32> -> vector<1x8x16xf32>
    %26 = arith.truncf %25 : vector<1x8x16xf32> to vector<1x8x16xbf16>
    %27 = vector.extract_strided_slice %4 {offsets = [0, 16], sizes = [8, 16], strides = [1, 1]} : vector<8x192xf32> to vector<8x16xf32>
    %28 = vector.extract_strided_slice %4 {offsets = [0, 80], sizes = [8, 16], strides = [1, 1]} : vector<8x192xf32> to vector<8x16xf32>
    %29 = vector.extract_strided_slice %4 {offsets = [0, 144], sizes = [8, 16], strides = [1, 1]} : vector<8x192xf32> to vector<8x16xf32>
    %30 = arith.truncf %27 : vector<8x16xf32> to vector<8x16xbf16>
    %31 = vector.shape_cast %30 : vector<8x16xbf16> to vector<1x8x16xbf16>
    %32 = arith.truncf %28 : vector<8x16xf32> to vector<8x16xbf16>
    %33 = vector.shape_cast %32 : vector<8x16xbf16> to vector<1x8x16xbf16>
    %34 = arith.truncf %29 : vector<8x16xf32> to vector<8x16xbf16>
    %35 = vector.shape_cast %34 : vector<8x16xbf16> to vector<1x8x16xbf16>
    %cst_8 = arith.constant dense<0.000000e+00> : vector<1x8x8xf32>
    %36 = tpu.matmul %31, %33, %cst_8 {dimension_numbers = #tpu.dot_dimension_numbers<[2], [2], [1], [1], [0, 0, 0, 1, 1, 1], [0], [0]>} : vector<1x8x16xbf16>, vector<1x8x16xbf16>, vector<1x8x8xf32> -> vector<1x8x8xf32>
    %cst_9 = arith.constant dense<0xFF800000> : vector<1x8xf32>
    %37 = vector.multi_reduction <maximumf>, %36, %cst_9 [2] : vector<1x8x8xf32> to vector<1x8xf32>
    %38 = vector.shape_cast %37 : vector<1x8xf32> to vector<1x8x1xf32>
    %39 = vector.broadcast %38 : vector<1x8x1xf32> to vector<1x8x8xf32>
    %40 = arith.subf %36, %39 : vector<1x8x8xf32>
    %41 = math.exp %40 : vector<1x8x8xf32>
    %cst_10 = arith.constant dense<0.000000e+00> : vector<1x8xf32>
    %42 = vector.multi_reduction <add>, %41, %cst_10 [2] : vector<1x8x8xf32> to vector<1x8xf32>
    %43 = vector.shape_cast %42 : vector<1x8xf32> to vector<1x8x1xf32>
    %44 = vector.broadcast %43 : vector<1x8x1xf32> to vector<1x8x8xf32>
    %45 = arith.divf %41, %44 : vector<1x8x8xf32>
    %46 = arith.truncf %45 : vector<1x8x8xf32> to vector<1x8x8xbf16>
    %cst_11 = arith.constant dense<0.000000e+00> : vector<1x8x16xf32>
    %47 = tpu.matmul %46, %35, %cst_11 {dimension_numbers = #tpu.dot_dimension_numbers<[2], [1], [1], [2], [0, 0, 0, 1, 1, 2], [0], [0]>} : vector<1x8x8xbf16>, vector<1x8x16xbf16>, vector<1x8x16xf32> -> vector<1x8x16xf32>
    %48 = arith.truncf %47 : vector<1x8x16xf32> to vector<1x8x16xbf16>
    %49 = vector.extract_strided_slice %4 {offsets = [0, 32], sizes = [8, 16], strides = [1, 1]} : vector<8x192xf32> to vector<8x16xf32>
    %50 = vector.extract_strided_slice %4 {offsets = [0, 96], sizes = [8, 16], strides = [1, 1]} : vector<8x192xf32> to vector<8x16xf32>
    %51 = vector.extract_strided_slice %4 {offsets = [0, 160], sizes = [8, 16], strides = [1, 1]} : vector<8x192xf32> to vector<8x16xf32>
    %52 = arith.truncf %49 : vector<8x16xf32> to vector<8x16xbf16>
    %53 = vector.shape_cast %52 : vector<8x16xbf16> to vector<1x8x16xbf16>
    %54 = arith.truncf %50 : vector<8x16xf32> to vector<8x16xbf16>
    %55 = vector.shape_cast %54 : vector<8x16xbf16> to vector<1x8x16xbf16>
    %56 = arith.truncf %51 : vector<8x16xf32> to vector<8x16xbf16>
    %57 = vector.shape_cast %56 : vector<8x16xbf16> to vector<1x8x16xbf16>
    %cst_12 = arith.constant dense<0.000000e+00> : vector<1x8x8xf32>
    %58 = tpu.matmul %53, %55, %cst_12 {dimension_numbers = #tpu.dot_dimension_numbers<[2], [2], [1], [1], [0, 0, 0, 1, 1, 1], [0], [0]>} : vector<1x8x16xbf16>, vector<1x8x16xbf16>, vector<1x8x8xf32> -> vector<1x8x8xf32>
    %cst_13 = arith.constant dense<0xFF800000> : vector<1x8xf32>
    %59 = vector.multi_reduction <maximumf>, %58, %cst_13 [2] : vector<1x8x8xf32> to vector<1x8xf32>
    %60 = vector.shape_cast %59 : vector<1x8xf32> to vector<1x8x1xf32>
    %61 = vector.broadcast %60 : vector<1x8x1xf32> to vector<1x8x8xf32>
    %62 = arith.subf %58, %61 : vector<1x8x8xf32>
    %63 = math.exp %62 : vector<1x8x8xf32>
    %cst_14 = arith.constant dense<0.000000e+00> : vector<1x8xf32>
    %64 = vector.multi_reduction <add>, %63, %cst_14 [2] : vector<1x8x8xf32> to vector<1x8xf32>
    %65 = vector.shape_cast %64 : vector<1x8xf32> to vector<1x8x1xf32>
    %66 = vector.broadcast %65 : vector<1x8x1xf32> to vector<1x8x8xf32>
    %67 = arith.divf %63, %66 : vector<1x8x8xf32>
    %68 = arith.truncf %67 : vector<1x8x8xf32> to vector<1x8x8xbf16>
    %cst_15 = arith.constant dense<0.000000e+00> : vector<1x8x16xf32>
    %69 = tpu.matmul %68, %57, %cst_15 {dimension_numbers = #tpu.dot_dimension_numbers<[2], [1], [1], [2], [0, 0, 0, 1, 1, 2], [0], [0]>} : vector<1x8x8xbf16>, vector<1x8x16xbf16>, vector<1x8x16xf32> -> vector<1x8x16xf32>
    %70 = arith.truncf %69 : vector<1x8x16xf32> to vector<1x8x16xbf16>
    %71 = vector.extract_strided_slice %4 {offsets = [0, 48], sizes = [8, 16], strides = [1, 1]} : vector<8x192xf32> to vector<8x16xf32>
    %72 = vector.extract_strided_slice %4 {offsets = [0, 112], sizes = [8, 16], strides = [1, 1]} : vector<8x192xf32> to vector<8x16xf32>
    %73 = vector.extract_strided_slice %4 {offsets = [0, 176], sizes = [8, 16], strides = [1, 1]} : vector<8x192xf32> to vector<8x16xf32>
    %74 = arith.truncf %71 : vector<8x16xf32> to vector<8x16xbf16>
    %75 = vector.shape_cast %74 : vector<8x16xbf16> to vector<1x8x16xbf16>
    %76 = arith.truncf %72 : vector<8x16xf32> to vector<8x16xbf16>
    %77 = vector.shape_cast %76 : vector<8x16xbf16> to vector<1x8x16xbf16>
    %78 = arith.truncf %73 : vector<8x16xf32> to vector<8x16xbf16>
    %79 = vector.shape_cast %78 : vector<8x16xbf16> to vector<1x8x16xbf16>
    %cst_16 = arith.constant dense<0.000000e+00> : vector<1x8x8xf32>
    %80 = tpu.matmul %75, %77, %cst_16 {dimension_numbers = #tpu.dot_dimension_numbers<[2], [2], [1], [1], [0, 0, 0, 1, 1, 1], [0], [0]>} : vector<1x8x16xbf16>, vector<1x8x16xbf16>, vector<1x8x8xf32> -> vector<1x8x8xf32>
    %cst_17 = arith.constant dense<0xFF800000> : vector<1x8xf32>
    %81 = vector.multi_reduction <maximumf>, %80, %cst_17 [2] : vector<1x8x8xf32> to vector<1x8xf32>
    %82 = vector.shape_cast %81 : vector<1x8xf32> to vector<1x8x1xf32>
    %83 = vector.broadcast %82 : vector<1x8x1xf32> to vector<1x8x8xf32>
    %84 = arith.subf %80, %83 : vector<1x8x8xf32>
    %85 = math.exp %84 : vector<1x8x8xf32>
    %cst_18 = arith.constant dense<0.000000e+00> : vector<1x8xf32>
    %86 = vector.multi_reduction <add>, %85, %cst_18 [2] : vector<1x8x8xf32> to vector<1x8xf32>
    %87 = vector.shape_cast %86 : vector<1x8xf32> to vector<1x8x1xf32>
    %88 = vector.broadcast %87 : vector<1x8x1xf32> to vector<1x8x8xf32>
    %89 = arith.divf %85, %88 : vector<1x8x8xf32>
    %90 = arith.truncf %89 : vector<1x8x8xf32> to vector<1x8x8xbf16>
    %cst_19 = arith.constant dense<0.000000e+00> : vector<1x8x16xf32>
    %91 = tpu.matmul %90, %79, %cst_19 {dimension_numbers = #tpu.dot_dimension_numbers<[2], [1], [1], [2], [0, 0, 0, 1, 1, 2], [0], [0]>} : vector<1x8x8xbf16>, vector<1x8x16xbf16>, vector<1x8x16xf32> -> vector<1x8x16xf32>
    %92 = arith.truncf %91 : vector<1x8x16xf32> to vector<1x8x16xbf16>
    %93 = tpu.concatenate %26, %48, %70, %92 in 2 : vector<1x8x16xbf16>, vector<1x8x16xbf16>, vector<1x8x16xbf16>, vector<1x8x16xbf16> -> vector<1x8x64xbf16>
    %94 = vector.shape_cast %93 : vector<1x8x64xbf16> to vector<8x64xbf16>
    %c0_20 = arith.constant 0 : index
    %c0_21 = arith.constant 0 : index
    %95 = vector.load %arg3[%c0_20, %c0_21] : memref<64x32xbf16, #tpu.memory_space<vmem>>, vector<64x32xbf16>
    %cst_22 = arith.constant dense<0.000000e+00> : vector<8x32xf32>
    %96 = tpu.matmul %94, %95, %cst_22 {dimension_numbers = #tpu.dot_dimension_numbers<[1], [0], [0], [1], [0, 0, 1, 1], [], []>} : vector<8x64xbf16>, vector<64x32xbf16>, vector<8x32xf32> -> vector<8x32xf32>
    %c0_23 = arith.constant 0 : index
    %c0_24 = arith.constant 0 : index
    %97 = vector.load %arg4[%c0_23, %c0_24] : memref<1x32xf32, #tpu.memory_space<vmem>>, vector<1x32xf32>
    %98 = vector.broadcast %97 : vector<1x32xf32> to vector<8x32xf32>
    %99 = arith.addf %96, %98 : vector<8x32xf32>
    %100 = vector.shape_cast %99 : vector<8x32xf32> to vector<1x8x32xf32>
    %c0_25 = arith.constant 0 : index
    %c0_26 = arith.constant 0 : index
    %c0_27 = arith.constant 0 : index
    %101 = vector.load %arg5[%c0_25, %c0_26, %c0_27] : memref<1x8x32xf32, #tpu.memory_space<vmem>>, vector<1x8x32xf32>
    tpu.vector_store %arg5[%c0_25, %c0_26, %c0_27], %100 {strides = array<i32>} : memref<1x8x32xf32, #tpu.memory_space<vmem>>, vector<1x8x32xf32>,
    return
  }
  func.func @transform_0(%arg0: i32) -> (i32, i32, i32) {
    %c0_i32 = arith.constant 0 : i32
    %c0_i32_0 = arith.constant 0 : i32
    %c0_i32_1 = arith.constant 0 : i32
    return %arg0, %c0_i32, %c0_i32_0 : i32, i32, i32
  }
  func.func @transform_1(%arg0: i32) -> (i32, i32) {
    %c0_i32 = arith.constant 0 : i32
    %c0_i32_0 = arith.constant 0 : i32
    %c0_i32_1 = arith.constant 0 : i32
    return %c0_i32, %c0_i32_0 : i32, i32
  }
  func.func @transform_2(%arg0: i32) -> (i32, i32) {
    %c0_i32 = arith.constant 0 : i32
    %c0_i32_0 = arith.constant 0 : i32
    %c0_i32_1 = arith.constant 0 : i32
    return %c0_i32, %c0_i32_0 : i32, i32
  }
  func.func @transform_3(%arg0: i32) -> (i32, i32) {
    %c0_i32 = arith.constant 0 : i32
    %c0_i32_0 = arith.constant 0 : i32
    %c0_i32_1 = arith.constant 0 : i32
    return %c0_i32, %c0_i32_0 : i32, i32
  }
  func.func @transform_4(%arg0: i32) -> (i32, i32, i32) {
    %c0_i32 = arith.constant 0 : i32
    %c0_i32_0 = arith.constant 0 : i32
    %c0_i32_1 = arith.constant 0 : i32
    return %arg0, %c0_i32, %c0_i32_0 : i32, i32, i32
  }
}

</mosaic_0001>

<bundles_post_ra>
// kernel: tpu_custom_call.1
= control target key start
LH: loop header
LB: loop body
LE: loop exit
PB: predicated region body
PF: predicated region fallthrough
CT: control target
= control target key end

     0   :  { %9 = vsyncpa [#allocation3], 0  ;;  %s1787_s0 = inlined_call_operand.hbm [shape: f32[2,8,32], index: 0, kind: input, shape index: {}]   ;;  %s1788_s1 = inlined_call_operand.hbm [shape: bf16[32,192], index: 1, kind: input, shape index: {}]   ;;  %s1789_s2 = inlined_call_operand.hbm [shape: bf16[64,32], index: 2, kind: input, shape index: {}]   ;;  %s1790_s3 = inlined_call_operand.hbm [shape: f32[1,32], index: 3, kind: input, shape index: {}]   ;;  %s1791_s4 = inlined_call_operand.hbm [shape: f32[2,8,32], index: 4, kind: output, shape index: {}]  }
   0x1   :  { %11 = vsyncpa [#allocation3 + $0x1], 0 }
   0x2   :  { %12 = vsyncpa [#allocation6], 0 }
   0x3   :  { %13 = vsyncpa [#allocation9], 0 }
   0x4   :  { %14 = vsyncpa [#allocation4], 0 }
   0x5   :  { %16 = vsyncpa [#allocation4 + $0x1], 0  ;;  %s1456_s15 = smov 0   ;;  %s1458_s16 = smov 0  }
   0x6   :  { %s1460_s17 = smov 0   ;;  %s1462_s18 = smov 0  }
   0x7 LB: > { %s1477_s19 = sadd.s32 4294967295, %s1410_s18   ;;  %s987_s20 = sadd.s32 4294967294, %s1410_s18   ;;  %s1410_s18 = sphi %s1462_s18, %s1814_s18   ;;  %s1406_s17 = sphi %s1460_s17, %s1813_s17   ;;  %s1402_s16 = sphi %s1458_s16, %s1812_s16   ;;  %s1398_s15 = sphi %s1456_s15, %s1811_s15  }
   0x8   : > { %p42_p0 = scmp.ne.s32.totalorder %s1402_s16, %s1398_s15  ;;  %p1792_p1 = scmp.eq.s32.totalorder %s1477_s19, 0 }
   0x9   : > { %p135_p3 = scmp.eq.s32.totalorder %s987_s20, 1  ;;  %p988_p5 = scmp.ge.s32.totalorder %s1410_s18, 1 }
   0xa   : > { %p1486_p4 = por %p1792_p1, %p42_p0  ;;  %p142_p7 = scmp.lt.s32.totalorder %s1410_s18, 3 }
   0xb   : > { %p1491_p6 = por %p135_p3, %p42_p0  ;;  %s1412_s24 = smov [#allocation5]  }
   0xc   : > { %s1795_s21 = scalar_select %p1486_p4, 1, 0 }
   0xd   : > { %s1796_s22 = scalar_select %p1491_p6, 1, 0 }
   0xe   : > { %p1496_p8 = pnand %p988_p5, %p142_p7  ;;  %s154_s25 = sshll.u32 %s1412_s24, 4  ;;  %s1500_s25 = int_to_ptr.vmem [resolvable:$true] %s154_s25 }
   0xf   : > { %s1413_s27 = smov [#allocation7]   ;;  %s1222_s5 = scalar_lea.hbm %s1788_s1, 512 }
  0x10   : > { %s1797_s23 = scalar_select %p1496_p8, 1, 0 }
  0x11   : > { %p1121_p9 = pneg %p1496_p8  ;;  %s167_s28 = sshll.u32 %s1413_s27, 4  ;;  %s1511_s28 = int_to_ptr.vmem [resolvable:$true] %s167_s28 }
  0x12   : > { %p1223_p12 = scmp.ne.s32.totalorder %s1788_s1, %s1222_s5  ;;  %p1229_p5 = scmp.lt.u32.totalorder %s1222_s5, %s1788_s1 }
  0x13   : > { %p1507_p11 = pnand %p1121_p9, %p1792_p1 }
  0x15   : > { %p1521_p13 = pneg %p1507_p11 }
  0x17   : > { %p1225_p0 = pnand %p1521_p13, %p1223_p12 }
  0x19   : > { %p1226_p3 = pneg %p1225_p0 }
  0x1b   : > { %p1231_p7 = pnand %p1229_p5, %p1226_p3 }
  0x1d   : > { %1234 = shalt.err (!%p1231_p7)
}
  0x1e   : > { %s1235_s11 = scalar_lea.vmem %s1500_s25, 512  ;;  %p1243_p2 = scmp.lt.s32.totalorder %s1500_s25, %s1500_s25 }
  0x1f   : > { %p1236_p9 = scmp.ne.s32.totalorder %s1500_s25, %s1235_s11  ;;  %p1244_p6 = scmp.lt.s32.totalorder %s1235_s11, %s1235_s11 }
  0x21   : > { %p1238_p10 = pnand %p1236_p9, %p1521_p13  ;;  %p1245_p12 = por %p1244_p6, %p1243_p2 }
  0x23   : > { %p1239_p1 = pneg %p1238_p10 }
  0x25   : > { %p1246_p0 = pnand %p1245_p12, %p1239_p1 }
  0x27   : > { %1249 = shalt.err (!%p1246_p0)
}
  0x28   : > { %s1414_s12 = smov 128   ;;  %s1415_s13 = smov 8  }
  0x29   : > { %1124 = dma.hbm_to_vmem [thread:$0]  (!%p1507_p11), %s1788_s1, 512, %s1500_s25, [#allocation6], %s1414_s12, %s1414_s12, %s1415_s13  }
  0x2a   : > { %s1250_s29 = scalar_lea.hbm %s1789_s2, 512 }
  0x2b   : > { %p1251_p2 = scmp.ne.s32.totalorder %s1789_s2, %s1250_s29  ;;  %p1257_p10 = scmp.lt.u32.totalorder %s1250_s29, %s1789_s2 }
  0x2d   : > { %p1253_p1 = pnand %p1251_p2, %p1521_p13 }
  0x2f   : > { %p1254_p6 = pneg %p1253_p1 }
  0x31   : > { %p1259_p3 = pnand %p1257_p10, %p1254_p6 }
  0x33   : > { %1262 = shalt.err (!%p1259_p3)
}
  0x34   : > { %s1263_s25 = scalar_lea.vmem %s1511_s28, 512  ;;  %p1271_p12 = scmp.lt.s32.totalorder %s1511_s28, %s1511_s28 }
  0x35   : > { %p1264_p5 = scmp.ne.s32.totalorder %s1511_s28, %s1263_s25  ;;  %p1272_p0 = scmp.lt.s32.totalorder %s1263_s25, %s1263_s25 }
  0x37   : > { %p1266_p7 = pnand %p1264_p5, %p1521_p13  ;;  %p1273_p2 = por %p1272_p0, %p1271_p12 }
  0x39   : > { %p1267_p9 = pneg %p1266_p7 }
  0x3b   : > { %p1274_p1 = pnand %p1273_p2, %p1267_p9 }
  0x3d   : > { %1277 = shalt.err (!%p1274_p1)
}
  0x3e   : > { %s1416_s9 = smov 64   ;;  %s1417_s10 = smov 4  }
  0x3f   : > { %1127 = dma.hbm_to_vmem [thread:$0]  (!%p1507_p11), %s1789_s2, 512, %s1511_s28, [#allocation6], %s1416_s9, %s1416_s9, %s1417_s10  }
  0x40   : > { %s1418_s13 = smov [#allocation8]   ;;  %s1566_s20 = sadd.s32 1, %s1410_s18  }
  0x41   : > { %s181_s14 = sshll.u32 %s1418_s13, 4  ;;  %s1278_s29 = scalar_lea.hbm %s1790_s3, 16  ;;  %s182_s14 = int_to_ptr.vmem [resolvable:$true] %s181_s14 }
  0x42   : > { %p1279_p6 = scmp.ne.s32.totalorder %s1790_s3, %s1278_s29  ;;  %p1285_p5 = scmp.lt.u32.totalorder %s1278_s29, %s1790_s3 }
  0x44   : > { %p1281_p10 = pnand %p1279_p6, %p1521_p13 }
  0x46   : > { %p1282_p3 = pneg %p1281_p10 }
  0x48   : > { %p1287_p7 = pnand %p1285_p5, %p1282_p3 }
  0x4a   : > { %1290 = shalt.err (!%p1287_p7)
}
  0x4b   : > { %s1291_s28 = scalar_lea.vmem %s182_s14, 16  ;;  %s1298_s25 = scalar_lea.vmem %s182_s14, 32 }
  0x4c   : > { %p1292_p9 = scmp.ne.s32.totalorder %s182_s14, %s1291_s28  ;;  %p1299_p2 = scmp.lt.s32.totalorder %s182_s14, %s182_s14 }
  0x4d   : > { %p1300_p1 = scmp.lt.s32.totalorder %s1298_s25, %s1291_s28 }
  0x4e   : > { %p1294_p12 = pnand %p1292_p9, %p1521_p13 }
  0x4f   : > { %p1301_p4 = por %p1300_p1, %p1299_p2 }
  0x50   : > { %p1295_p0 = pneg %p1294_p12 }
  0x52   : > { %p1302_p8 = pnand %p1301_p4, %p1295_p0 }
  0x54   : > { %1305 = shalt.err (!%p1302_p8)
}
  0x55   : > { %1130 = dma.hbm_to_vmem [thread:$0]  (!%p1507_p11), %s1790_s3, 16, %s182_s14, [#allocation9]  }
  0x56   : > { %s26_s8 = ssub.s32 %s1410_s18, %s1566_s20  ;;  %s29_s11 = sadd.s32 1, %s1406_s17 }
  0x57   : > { %p27_p4 = scmp.eq.s32.totalorder %s26_s8, 0  ;;  %p36_p8 = scmp.ne.s32.totalorder %s1406_s17, %s1402_s16 }
  0x58   : > { %p37_p13 = scmp.eq.s32.totalorder %s1410_s18, 0  ;;  %p1142_p6 = scmp.lt.s32.totalorder %s1410_s18, 2 }
  0x59   : > { %s1594_s26 = scalar_select %p27_p4, %s1406_s17, %s29_s11  }
  0x5a   : > { %p38_p10 = por %p37_p13, %p36_p8  ;;  %p1800_p3 = scmp.eq.s32.totalorder %s1477_s19, 1 }
  0x5b   : > { %s192_s13 = sand.u32 1, %s1406_s17   ;;  %s994_s24 = sshll.u32 %s1410_s18, 7 }
  0x5c   : > { %p1598_p5 = por %p1800_p3, %p36_p8  ;;  %s993_s27 = sshll.u32 %s192_s13, 3 }
  0x5d   : > { %s1607_s14 = scalar_lea.hbm %s1787_s0, %s994_s24  ;;  %s196_s5 = scalar_lea.vmem [#allocation2], %s993_s27 }
  0x5e   : > { %s203_s6 = sshll.u32 %s196_s5, 4  ;;  %p1609_p11 = pnand %p1142_p6, %p38_p10  ;;  %s1613_s6 = int_to_ptr.vmem [resolvable:$true] %s203_s6 }
  0x5f   : > { %s193_s28 = scalar_lea.sflag [#allocation3], %s192_s13  ;;  %s1306_s25 = scalar_lea.hbm %s1607_s14, 128 }
  0x60   : > { %p1307_p7 = scmp.ne.s32.totalorder %s1607_s14, %s1306_s25  ;;  %p1308_p9 = pneg %p1609_p11 }
  0x61   : > { %s1311_s8 = scalar_lea.hbm %s1787_s0, 256  ;;  %p1312_p2 = scmp.lt.u32.totalorder %s1607_s14, %s1787_s0 }
  0x62   : > { %p1309_p12 = pnand %p1308_p9, %p1307_p7  ;;  %p1313_p1 = scmp.lt.u32.totalorder %s1311_s8, %s1306_s25 }
  0x63   : > { %p1315_p8 = scmp.lt.u32.totalorder %s1306_s25, %s1607_s14 }
  0x64   : > { %p1310_p0 = pneg %p1309_p12  ;;  %p1314_p4 = por %p1313_p1, %p1312_p2 }
  0x66   : > { %p1316_p13 = por %p1315_p8, %p1314_p4 }
  0x68   : > { %p1317_p6 = pnand %p1316_p13, %p1310_p0 }
  0x6a   : > { %1320 = shalt.err (!%p1317_p6)
}
  0x6b   : > { %s1321_s13 = scalar_lea.vmem %s1613_s6, 128  ;;  %s1419_s27 = smov [#allocation2]  }
  0x6c   : > { %p1322_p10 = scmp.ne.s32.totalorder %s1613_s6, %s1321_s13  ;;  %s1326_s29 = sshll.u32 %s1419_s27, 4  ;;  %s1327_s29 = int_to_ptr.vmem [resolvable:$false] %s1326_s29 }
  0x6d   : > { %s1328_s30 = scalar_lea.vmem %s1327_s29, 256  ;;  %p1329_p12 = scmp.lt.s32.totalorder %s1613_s6, %s1327_s29 }
  0x6e   : > { %p1324_p3 = pnand %p1322_p10, %p1308_p9  ;;  %p1330_p2 = scmp.lt.s32.totalorder %s1328_s30, %s1321_s13 }
  0x70   : > { %p1325_p7 = pneg %p1324_p3  ;;  %p1331_p1 = por %p1330_p2, %p1329_p12 }
  0x72   : > { %p1332_p4 = pnand %p1331_p1, %p1325_p7 }
  0x74   : > { %1335 = shalt.err (!%p1332_p4)
}
  0x75   : > { %1134 = dma.hbm_to_vmem [thread:$0]  (!%p1609_p11), %s1607_s14, 128, %s1613_s6, %s193_s28  }
  0x76   : > { %p1803_p0 = scmp.ne.s32.totalorder %s1797_s23, 0 }
  0x77   : > { %s1643_s5 = sand.u32 (!%p1803_p0), 1, %s1402_s16   ;;  %p1804_p9 = scmp.ne.s32.totalorder (!%p1803_p0), %s1795_s21, 0 }
  0x78   : > { %212 = sbr.rel (%p1803_p0) target bundleno = 1628 (0x65c), region = 36  ;;  %s996_s25 = sshll.u32 (!%p1803_p0), %s1643_s5, 3 }
  0x79   : > { %s215_s9 = scalar_lea.sflag (!%p1803_p0), [#allocation3], %s1643_s5  ;;  %s218_s10 = scalar_lea.vmem (!%p1803_p0), [#allocation2], %s996_s25 }
  0x7f   : > { %1381 = dma.done.wait (%p1804_p9), %s215_s9, 128  }
  0x80   : > { %1383 = vsyncadd (%p1804_p9), %s215_s9, 4294967168  ;;  %p1805_p11 = scmp.eq.s32.totalorder %s1477_s19, 0 }
  0x82   : > { %1385 = dma.done.wait (%p1805_p11), [#allocation6], 1024   ;;  %p1806_p8 = pmov %p1805_p11 }
  0x84   : > { %1387 = vsyncadd (%p1806_p8), [#allocation6], 4294966272  ;;  %p1807_p13 = pmov %p1806_p8 }
  0x85   : > { %p1808_p6 = pmov %p1806_p8 }
  0x86   : > { %1389 = dma.done.wait (%p1807_p13), [#allocation9], 16  }
  0x87   : > { %1391 = vsyncadd (%p1808_p6), [#allocation9], 4294967280  ;;  %v1420_v0 = vmov 0   ;;  %v1196_v1 = vld [vmem:[#allocation5 + $0x4] ss:$8 sps:$4 sm:$0xff]   ;;  %v256_v5 = vld [vmem:[%s218_s10] sm:$0xff] }
  0x88   : > { %318 = vmatprep.mubr.bf16.mxu0 %v1420_v0  ;;  %v1198_v2 = vld [vmem:[#allocation5] ss:$8 sps:$4 sm:$0xff]   ;;  %286 = vmatprep.subr.bf16.mxu0 %v1196_v1  ;;  %v1199_v3 = vld [vmem:[#allocation5 + $0x14] ss:$8 sps:$4 sm:$0xff]   ;;  %v1201_v4 = vld [vmem:[#allocation5 + $0x10] ss:$8 sps:$4 sm:$0xff]   ;;  %v257_v6 = vpack.c.bf16 %v256_v5, %v256_v5 }
  0x89   : > { %287 = vmatpush1.bf16.msra.mxu0 %v1198_v2  ;;  %vm282_vm0 = vcmask 261120   ;;  %v1421_v7 = vmov 0.0   ;;  %vm1422_vm1 = vmmov 0   ;;  %vm395_vm2 = vcmask 1043456   ;;  %s1423_s21 = smov 112   ;;  %s1424_s23 = smov 64  }
  0x8a   : > { %288 = vmatprep.subr.bf16.mxu0 %v1199_v3  ;;  %1045 = vmatprep.subr.bf16.mxu1 %v1421_v7  ;;  %s1425_s14 = smov 32   ;;  %s1426_s6 = smov 48   ;;  %vm332_vm3 = vcmask 130048   ;;  %vm379_vm4 = vcmask 64512   ;;  %vm788_vm5 = vcmask 392192   ;;  %vm830_vm6 = vcmask 523264  }
  0x8b   : > { %1047 = vmatprep.mubr.msk.bf16.mxu1 %vm1422_vm1, %v1421_v7  ;;  %s1427_s7 = smov 16   ;;  %s1428_s28 = smov 96  }
  0x8c   : > { %s1429_s8 = smov 80   ;;  %s1021_s11 = sshll.u32 %s1477_s19, 7 }
  0x8d   : > { %289 = vmatpush1.bf16.msra.mxu0 %v1201_v4  ;;  %s254_s24 = scalar_lea.vmem [#allocation10], %s996_s25  ;;  %s1742_s30 = scalar_lea.hbm %s1791_s4, %s1021_s11 }
  0x8e   : > { %1051 = vmatprep.subr.bf16.mxu0 %v1421_v7  ;;  %s888_s13 = sshll.u32 %s254_s24, 4  ;;  %s875_s19 = scalar_lea.sflag [#allocation4], %s1643_s5  ;;  %s1744_s13 = int_to_ptr.vmem [resolvable:$true] %s888_s13 }
  0x8f   : > { %s1336_s25 = scalar_lea.vmem %s1744_s13, 128  ;;  %s1430_s9 = smov [#allocation10]  }
  0x90   : > { %1005 = vmatmul.mubr.msk.bf16.vlgmr.msra.gmra.mrb[0].mxu0 %vm282_vm0, %v257_v6  ;;  %p1337_p10 = scmp.ne.s32.totalorder %s1744_s13, %s1336_s25  ;;  %s1340_s10 = sshll.u32 %s1430_s9, 4  ;;  %s1341_s10 = int_to_ptr.vmem [resolvable:$false] %s1340_s10 }
  0x91   : > { %1053 = vmatprep.mubr.msk.bf16.mxu0 %vm1422_vm1, %v1421_v7  ;;  %p1343_p12 = scmp.lt.s32.totalorder %s1744_s13, %s1341_s10 }
  0x92   : > { %p1338_p3 = pnand %p1337_p10, %p1598_p5 }
  0x94   : > { %p1339_p7 = pneg %p1338_p3 }
 0x163   : > { %v320_v8 = vpop.f32.mrb[0].mxu0 }
 0x164   : > { %v327_v9 = vpack.c.bf16 %v320_v8, %v320_v8  ;;  %v322_v10 = vpop.f32.mrb[1].mxu0 }
 0x165   : > { %v1668_v11 = vpack.c.bf16 %v322_v10, %v322_v10  ;;  %v324_v12 = vpop.f32.mrb[2].mxu0 }
 0x166   : > { %440 = vrot.lane.b32.xlu1 %v327_v9, %s1423_s21  ;;  %330 = vrot.lane.b32.xlu0 %v327_v9, %s1424_s23  ;;  %v325_v13 = vpop.f32.mrb[3].mxu0 }
 0x167   : > { %v397_v14 = vsel %vm395_vm2, %v1668_v11, 0 }
 0x168   : > { %1052 = vmatpush3.bf16.msra.mxu0 %v397_v14 }
 0x169   : > { %1063 = vmatprep.subr.bf16.mxu0 %v1421_v7 }
 0x16a   : > { %554 = vrot.lane.b32.xlu1 %v327_v9, %s1425_s14  ;;  %442 = vrot.lane.b32.xlu0 %v327_v9, %s1426_s6 }
 0x16e   : > { %665 = vrot.lane.b32.xlu1 %v327_v9, %s1427_s7  ;;  %552 = vrot.lane.b32.xlu0 %v327_v9, %s1428_s28 }
 0x172   : > { %663 = vrot.lane.b32.xlu0 %v327_v9, %s1429_s8 }
 0x1d8   : > { %v331_v15 = vpop.permute.xlu0 %330  ;;  %v441_v18 = vpop.permute.xlu1 %440 }
 0x1d9   : > { %v337_v16 = vsel %vm332_vm3, %v331_v15, 0 }
 0x1da   : > { %1046 = vmatpush3.bf16.xpose.msra.mxu1 %v337_v16 }
 0x1db   : > { %1057 = vmatprep.subr.bf16.mxu1 %v1421_v7 }
 0x1dc   : > { %v443_v17 = vpop.permute.xlu0 %442  ;;  %v555_v20 = vpop.permute.xlu1 %554 }
 0x1dd   : > { %v448_v19 = vsel %vm332_vm3, %v443_v17, 0  ;;  %v560_v21 = vsel %vm332_vm3, %v555_v20, 0 }
 0x1e0   : > { %v666_v22 = vpop.permute.xlu1 %665  ;;  %v553_v23 = vpop.permute.xlu0 %552 }
 0x1e1   : > { %1048 = vmatmul.mubr.msk.bf16.vlgmr.msra.gmra.mrb[0].mxu1 %vm332_vm3, %v327_v9  ;;  %v671_v24 = vsel %vm332_vm3, %v666_v22, 0 }
 0x1e2   : > { %1058 = vmatpush3.bf16.xpose.msra.mxu1 %v448_v19  ;;  %1059 = vmatprep.mubr.msk.bf16.mxu1 %vm1422_vm1, %v1421_v7 }
 0x1e3   : > { %1069 = vmatprep.subr.bf16.mxu1 %v1421_v7 }
 0x1e4   : > { %v664_v25 = vpop.permute.xlu0 %663 }
 0x1e9   : > { %1060 = vmatmul.mubr.msk.bf16.vlgmr.msra.gmra.mrb[4].mxu1 %vm332_vm3, %v441_v18 }
 0x1ea   : > { %1070 = vmatpush3.bf16.xpose.msra.mxu1 %v560_v21  ;;  %1071 = vmatprep.mubr.msk.bf16.mxu1 %vm1422_vm1, %v1421_v7 }
 0x1eb   : > { %1081 = vmatprep.subr.bf16.mxu1 %v1421_v7 }
 0x1f1   : > { %1072 = vmatmul.mubr.msk.bf16.vlgmr.msra.gmra.mrb[8].mxu1 %vm332_vm3, %v553_v23 }
 0x1f2   : > { %1082 = vmatpush3.bf16.xpose.msra.mxu1 %v671_v24  ;;  %1083 = vmatprep.mubr.msk.bf16.mxu1 %vm1422_vm1, %v1421_v7 }
 0x1f3   : > { %1093 = vmatprep.subr.bf16.mxu1 %v1421_v7 }
 0x1f9   : > { %1084 = vmatmul.mubr.msk.bf16.vlgmr.msra.gmra.mrb[12].mxu1 %vm332_vm3, %v664_v25 }
 0x1fa   : > { %1101 = vmatprep.mubr.msk.bf16.mxu1 %vm1422_vm1, %v1421_v7 }
 0x2b4   : > { %v373_v26 = vpop.f32.mrb[0].mxu1 }
 0x2b5   : > { %v1049_v27 = vpop.f32.mrb[1].mxu1  ;;  %v380_v28 = vsel %vm379_vm4, %v373_v26, -inf }
 0x2b6   : > { %381 = vmax.xlane.f32.xlu1 %v380_v28  ;;  %v376_v29 = vpop.f32.mrb[2].mxu1 }
 0x2b7   : > { %v1050_v30 = vpop.f32.mrb[3].mxu1  ;;  %v1202_v29 = vld [vmem:[#allocation7] sm:$0xff]  }
 0x2b8   : > { %1094 = vmatpush3.bf16.msra.mxu1 %v1202_v29 }
 0x2b9   : > { %1095 = vmatprep.subr.bf16.mxu1 %v1421_v7 }
 0x2bc   : > { %v484_v31 = vpop.f32.mrb[4].mxu1 }
 0x2bd   : > { %v1061_v32 = vpop.f32.mrb[5].mxu1  ;;  %v490_v33 = vsel %vm379_vm4, %v484_v31, -inf }
 0x2be   : > { %491 = vmax.xlane.f32.xlu0 %v490_v33  ;;  %v487_v34 = vpop.f32.mrb[6].mxu1 }
 0x2bf   : > { %v1062_v35 = vpop.f32.mrb[7].mxu1 }
 0x2c4   : > { %v596_v36 = vpop.f32.mrb[8].mxu1 }
 0x2c5   : > { %v1073_v37 = vpop.f32.mrb[9].mxu1  ;;  %v602_v38 = vsel %vm379_vm4, %v596_v36, -inf }
 0x2c6   : > { %603 = vmax.xlane.f32.xlu0 %v602_v38  ;;  %v599_v39 = vpop.f32.mrb[10].mxu1  ;;  %v1205_v38 = vld [vmem:[#allocation7 + $0x18] sm:$0xff]  }
 0x2c7   : > { %v1074_v40 = vpop.f32.mrb[11].mxu1 }
 0x2cc   : > { %v707_v41 = vpop.f32.mrb[12].mxu1 }
 0x2cd   : > { %v1085_v42 = vpop.f32.mrb[13].mxu1  ;;  %v713_v43 = vsel %vm379_vm4, %v707_v41, -inf }
 0x2ce   : > { %714 = vmax.xlane.f32.xlu1 %v713_v43  ;;  %v710_v44 = vpop.f32.mrb[14].mxu1 }
 0x2cf   : > { %v1086_v45 = vpop.f32.mrb[15].mxu1 }
 0x343   : > { %v382_v46 = vpop.xlane.xlu1 %381 }
 0x344   : > { %v383_v47 = vsub.f32 %v373_v26, %v382_v46 }
 0x346   : > { %v384_v48 = vmul.f32 1.442695, %v383_v47 }
 0x348   : > { %1206 = vpow2.f32 %v384_v48 }
 0x34b   : > { %v492_v49 = vpop.xlane.xlu0 %491 }
 0x34c   : > { %v493_v50 = vsub.f32 %v484_v31, %v492_v49  ;;  %v1203_v31 = vld [vmem:[#allocation7 + $0x8] sm:$0xff]  }
 0x34d   : > { %1096 = vmatpush3.bf16.msra.mxu1 %v1203_v31 }
 0x34e   : > { %v494_v51 = vmul.f32 1.442695, %v493_v50  ;;  %1097 = vmatprep.subr.bf16.mxu1 %v1421_v7 }
 0x350   : > { %1208 = vpow2.f32 %v494_v51 }
 0x352   : > { %v1207_v52 = vpop.eup %1206 }
 0x353   : > { %v604_v53 = vpop.xlane.xlu0 %603  ;;  %v386_v54 = vsel %vm379_vm4, %v1207_v52, 0.0 }
 0x354   : > { %v605_v55 = vsub.f32 %v596_v36, %v604_v53  ;;  %387 = vadd.xlane.f32.xlu0 %v386_v54  ;;  %v1204_v36 = vld [vmem:[#allocation7 + $0x10] sm:$0xff]   ;;  %v1014_v54 = vld [vmem:[#allocation8] ss:$0 sm:$0xff] }
 0x355   : > { %1098 = vmatpush3.bf16.msra.mxu1 %v1204_v36 }
 0x356   : > { %v606_v56 = vmul.f32 1.442695, %v605_v55  ;;  %1099 = vmatprep.subr.bf16.mxu1 %v1421_v7 }
 0x358   : > { %1210 = vpow2.f32 %v606_v56 }
 0x359   : > { %1100 = vmatpush3.bf16.msra.mxu1 %v1205_v38 }
 0x35a   : > { %v1209_v57 = vpop.eup %1208 }
 0x35b   : > { %v496_v58 = vsel %vm379_vm4, %v1209_v57, 0.0  ;;  %v715_v61 = vpop.xlane.xlu1 %714 }
 0x35c   : > { %497 = vadd.xlane.f32.xlu1 %v496_v58  ;;  %v716_v62 = vsub.f32 %v707_v41, %v715_v61 }
 0x35e   : > { %v717_v63 = vmul.f32 1.442695, %v716_v62 }
 0x360   : > { %1212 = vpow2.f32 %v717_v63 }
 0x362   : > { %v1211_v59 = vpop.eup %1210 }
 0x363   : > { %v608_v60 = vsel %vm379_vm4, %v1211_v59, 0.0 }
 0x364   : > { %609 = vadd.xlane.f32.xlu0 %v608_v60 }
 0x36a   : > { %v1213_v0 = vpop.eup %1212 }
 0x36b   : > { %v719_v1 = vsel %vm379_vm4, %v1213_v0, 0.0 }
 0x36d   : > { %614 = vrot.lane.b32.xlu1 %v1668_v11, %s1428_s28 }
 0x37a   : > { %503 = vrot.lane.b32.xlu0 %v1668_v11, %s1423_s21  ;;  %s1342_s21 = scalar_lea.vmem %s1341_s10, 256 }
 0x37b   : > { %p1344_p2 = scmp.lt.s32.totalorder %s1342_s21, %s1336_s25 }
 0x37d   : > { %p1345_p1 = por %p1344_p2, %p1343_p12 }
 0x37f   : > { %p1346_p4 = pnand %p1345_p1, %p1339_p7 }
 0x391   : > { %720 = vadd.xlane.f32.xlu1 %v719_v1 }
 0x3a2   : > { %725 = vrot.lane.b32.xlu1 %v1668_v11, %s1429_s8 }
 0x3e1   : > { %v388_v2 = vpop.xlane.xlu0 %387 }
 0x3e2   : > { %1214 = vrcp.f32 %v388_v2 }
 0x3e9   : > { %v498_v3 = vpop.xlane.xlu1 %497 }
 0x3ea   : > { %1216 = vrcp.f32 %v498_v3 }
 0x3ec   : > { %v1215_v4 = vpop.eup %1214 }
 0x3ed   : > { %v390_v5 = vmul.f32 %v1215_v4, %v1207_v52  ;;  %v615_v11 = vpop.permute.xlu1 %614 }
 0x3ee   : > { %v620_v15 = vsel %vm395_vm2, %v615_v11, 0 }
 0x3ef   : > { %v391_v6 = vpack.c.bf16 %v390_v5, %v390_v5 }
 0x3f1   : > { %v610_v8 = vpop.xlane.xlu0 %609  ;;  %1054 = vmatmul.mubr.msk.bf16.vlgmr.msra.gmra.mrb[4].mxu0 %vm379_vm4, %v391_v6 }
 0x3f2   : > { %1218 = vrcp.f32 %v610_v8  ;;  %1065 = vmatprep.mubr.msk.bf16.mxu0 %vm1422_vm1, %v1421_v7 }
 0x3f4   : > { %v1217_v9 = vpop.eup %1216 }
 0x3f5   : > { %v500_v10 = vmul.f32 %v1217_v9, %v1209_v57  ;;  %v504_v12 = vpop.permute.xlu0 %503 }
 0x3f6   : > { %v509_v13 = vsel %vm395_vm2, %v504_v12, 0 }
 0x3f7   : > { %1064 = vmatpush3.bf16.msra.mxu0 %v509_v13  ;;  %v501_v14 = vpack.c.bf16 %v500_v10, %v500_v10 }
 0x3f8   : > { %1075 = vmatprep.subr.bf16.mxu0 %v1421_v7 }
 0x3fa   : > { %1066 = vmatmul.mubr.msk.bf16.vlgmr.msra.gmra.mrb[8].mxu0 %vm379_vm4, %v501_v14 }
 0x3fb   : > { %1076 = vmatpush3.bf16.msra.mxu0 %v620_v15  ;;  %1077 = vmatprep.mubr.msk.bf16.mxu0 %vm1422_vm1, %v1421_v7 }
 0x3fc   : > { %v1219_v16 = vpop.eup %1218  ;;  %1087 = vmatprep.subr.bf16.mxu0 %v1421_v7 }
 0x3fd   : > { %v612_v17 = vmul.f32 %v1219_v16, %v1211_v59 }
 0x3ff   : > { %v613_v18 = vpack.c.bf16 %v612_v17, %v612_v17 }
 0x402   : > { %1078 = vmatmul.mubr.msk.bf16.vlgmr.msra.gmra.mrb[12].mxu0 %vm379_vm4, %v613_v18 }
 0x403   : > { %1089 = vmatprep.mubr.msk.bf16.mxu0 %vm1422_vm1, %v1421_v7 }
 0x41e   : > { %v721_v19 = vpop.xlane.xlu1 %720 }
 0x41f   : > { %1220 = vrcp.f32 %v721_v19 }
 0x422   : > { %v726_v20 = vpop.permute.xlu1 %725 }
 0x423   : > { %v731_v21 = vsel %vm395_vm2, %v726_v20, 0 }
 0x424   : > { %1088 = vmatpush3.bf16.msra.mxu0 %v731_v21 }
 0x429   : > { %v1221_v22 = vpop.eup %1220 }
 0x42a   : > { %v723_v23 = vmul.f32 %v1221_v22, %v1213_v0 }
 0x42c   : > { %v724_v24 = vpack.c.bf16 %v723_v23, %v723_v23 }
 0x42e   : > { %1090 = vmatmul.mubr.msk.bf16.vlgmr.msra.gmra.mrb[16].mxu0 %vm379_vm4, %v724_v24 }
 0x4c4   : > { %v433_v25 = vpop.f32.mrb[4].mxu0 }
 0x4c5   : > { %v1055_v26 = vpop.f32.mrb[5].mxu0  ;;  %v439_v49 = vpack.c.bf16 %v433_v25, %v433_v25 }
 0x4c6   : > { %v436_v27 = vpop.f32.mrb[6].mxu0 }
 0x4c7   : > { %v1056_v28 = vpop.f32.mrb[7].mxu0 }
 0x4cd   : > { %v545_v30 = vpop.f32.mrb[8].mxu0 }
 0x4ce   : > { %v551_v32 = vpack.c.bf16 %v545_v30, %v545_v30  ;;  %v1067_v33 = vpop.f32.mrb[9].mxu0 }
 0x4cf   : > { %v548_v34 = vpop.f32.mrb[10].mxu0 }
 0x4d0   : > { %775 = vrot.lane.b32.xlu0 %v551_v32, %s1427_s7  ;;  %v1068_v35 = vpop.f32.mrb[11].mxu0 }
 0x4d5   : > { %v656_v37 = vpop.f32.mrb[12].mxu0 }
 0x4d6   : > { %v662_v39 = vpack.c.bf16 %v656_v37, %v656_v37  ;;  %v1079_v40 = vpop.f32.mrb[13].mxu0 }
 0x4d7   : > { %v659_v41 = vpop.f32.mrb[14].mxu0 }
 0x4d8   : > { %778 = vrot.lane.b32.xlu1 %v662_v39, %s1425_s14  ;;  %v1080_v42 = vpop.f32.mrb[15].mxu0 }
 0x501   : > { %v767_v43 = vpop.f32.mrb[16].mxu0 }
 0x502   : > { %v773_v44 = vpack.c.bf16 %v767_v43, %v767_v43  ;;  %v1091_v45 = vpop.f32.mrb[17].mxu0 }
 0x503   : > { %v770_v46 = vpop.f32.mrb[18].mxu0 }
 0x504   : > { %781 = vrot.lane.b32.xlu0 %v773_v44, %s1426_s6  ;;  %v1092_v47 = vpop.f32.mrb[19].mxu0 }
 0x542   : > { %v776_v48 = vpop.permute.xlu0 %775 }
 0x543   : > { %v785_v7 = vsel %vm332_vm3, %v439_v49, %v776_v48 }
 0x54a   : > { %v779_v50 = vpop.permute.xlu1 %778 }
 0x54b   : > { %v787_v51 = vsel %vm282_vm0, %v785_v7, %v779_v50 }
 0x576   : > { %v782_v52 = vpop.permute.xlu0 %781 }
 0x577   : > { %v790_v53 = vsel %vm788_vm5, %v787_v51, %v782_v52 }
 0x578   : > { %1102 = vmatmul.mubr.msk.bf16.vlgmr.msra.gmra.mrb[16].mxu1 %vm830_vm6, %v790_v53 }
 0x64b   : > { %v867_v55 = vpop.f32.mrb[16].mxu1 }
 0x64c   : > { %v868_v56 = vadd.f32 %v1014_v54, %v867_v55  ;;  %v1103_v57 = vpop.f32.mrb[17].mxu1 }
 0x64d   : > { %v870_v58 = vpop.f32.mrb[18].mxu1 }
 0x64e   : > { %v1104_v59 = vpop.f32.mrb[19].mxu1  ;;  %873 = vst.msk [vmem:[%s254_s24] sm:$0xff] %vm282_vm0, %v868_v56 }
 0x64f   : > { %1349 = shalt.err (!%p1346_p4)
}
 0x650   : > { %s1350_s5 = scalar_lea.hbm %s1742_s30, 128  ;;  %s1354_s6 = scalar_lea.hbm %s1791_s4, 256 }
 0x651   : > { %p1351_p0 = scmp.ne.s32.totalorder %s1742_s30, %s1350_s5  ;;  %p1355_p8 = scmp.lt.u32.totalorder %s1742_s30, %s1791_s4 }
 0x652   : > { %p1356_p13 = scmp.lt.u32.totalorder %s1354_s6, %s1350_s5  ;;  %p1358_p10 = scmp.lt.u32.totalorder %s1350_s5, %s1742_s30 }
 0x653   : > { %p1352_p9 = pnand %p1351_p0, %p1598_p5 }
 0x654   : > { %p1357_p6 = por %p1356_p13, %p1355_p8 }
 0x655   : > { %p1353_p11 = pneg %p1352_p9 }
 0x656   : > { %p1359_p3 = por %p1358_p10, %p1357_p6 }
 0x658   : > { %p1360_p7 = pnand %p1359_p3, %p1353_p11 }
 0x65a   : > { %1363 = shalt.err (!%p1360_p7)
}
 0x65b   : > { %1119 = dma.vmem_to_hbm [thread:$0]  (%p1598_p5), %s1744_s13, 128, %s1742_s30, %s875_s19  }
 0x65c PF: > { %s900_s8 = sand.u32 1, %s1398_s15   ;;  %p1809_p12 = scmp.ne.s32.totalorder %s1796_s22, 0 }
 0x65d   : > { %p1810_p2 = scmp.ge.s32.totalorder %s1410_s18, 2  ;;  %s901_s11 = scalar_lea.sflag [#allocation4], %s900_s8 }
 0x65f   : > { %p1136_p1 = pnand %p1810_p2, %p1809_p12 }
 0x661   : > { %1393 = dma.done.wait (!%p1136_p1), %s901_s11, 128  }
 0x662   : > { %1395 = vsyncadd (!%p1136_p1), %s901_s11, 4294967168  ;;  %p19_p4 = scmp.ge.s32.totalorder %s1566_s20, 4   ;;  %s1811_s15 = smov %s1402_s16 }
 0x663   : > { %s1812_s16 = smov %s1406_s17  ;;  %s1813_s17 = smov %s1594_s26 }
 0x664   : > { %s1814_s18 = smov %s1566_s20  ;;  %21 = sbr.rel (!%p19_p4) target bundleno = 7 (0x7), region = 93 }
 0x66b   :  { %906 = vsyncpa [#allocation3], 1 }
 0x66c   :  { %908 = vsyncpa [#allocation3 + $0x1], 1 }
 0x66d   :  { %909 = vsyncpa [#allocation6], 1 }
 0x66e   :  { %910 = vsyncpa [#allocation9], 1 }
 0x66f   :  { %911 = vsyncpa [#allocation4], 1 }
 0x670   :  { %913 = vsyncpa [#allocation4 + $0x1], 1 }

// kernel: tpu_custom_call.1
= control target key start
LH: loop header
LB: loop body
LE: loop exit
PB: predicated region body
PF: predicated region fallthrough
CT: control target
= control target key end

     0   :  { %9 = vsyncpa [#allocation3], 0  ;;  %s1787_s0 = inlined_call_operand.hbm [shape: f32[2,8,32], index: 0, kind: input, shape index: {}]   ;;  %s1788_s1 = inlined_call_operand.hbm [shape: bf16[32,192], index: 1, kind: input, shape index: {}]   ;;  %s1789_s2 = inlined_call_operand.hbm [shape: bf16[64,32], index: 2, kind: input, shape index: {}]   ;;  %s1790_s3 = inlined_call_operand.hbm [shape: f32[1,32], index: 3, kind: input, shape index: {}]   ;;  %s1791_s4 = inlined_call_operand.hbm [shape: f32[2,8,32], index: 4, kind: output, shape index: {}]  }
   0x1   :  { %11 = vsyncpa [#allocation3 + $0x1], 0 }
   0x2   :  { %12 = vsyncpa [#allocation6], 0 }
   0x3   :  { %13 = vsyncpa [#allocation9], 0 }
   0x4   :  { %14 = vsyncpa [#allocation4], 0 }
   0x5   :  { %16 = vsyncpa [#allocation4 + $0x1], 0  ;;  %s1456_s15 = smov 0   ;;  %s1458_s16 = smov 0  }
   0x6   :  { %s1460_s17 = smov 0   ;;  %s1462_s18 = smov 0  }
   0x7 LB: > { %s1477_s19 = sadd.s32 4294967295, %s1410_s18   ;;  %s987_s20 = sadd.s32 4294967294, %s1410_s18   ;;  %s1410_s18 = sphi %s1462_s18, %s1814_s18   ;;  %s1406_s17 = sphi %s1460_s17, %s1813_s17   ;;  %s1402_s16 = sphi %s1458_s16, %s1812_s16   ;;  %s1398_s15 = sphi %s1456_s15, %s1811_s15  }
   0x8   : > { %p42_p0 = scmp.ne.s32.totalorder %s1402_s16, %s1398_s15  ;;  %p1792_p1 = scmp.eq.s32.totalorder %s1477_s19, 0 }
   0x9   : > { %p135_p3 = scmp.eq.s32.totalorder %s987_s20, 1  ;;  %p988_p5 = scmp.ge.s32.totalorder %s1410_s18, 1 }
   0xa   : > { %p1486_p4 = por %p1792_p1, %p42_p0  ;;  %p142_p7 = scmp.lt.s32.totalorder %s1410_s18, 3 }
   0xb   : > { %p1491_p6 = por %p135_p3, %p42_p0  ;;  %s1412_s24 = smov [#allocation5]  }
   0xc   : > { %s1795_s21 = scalar_select %p1486_p4, 1, 0 }
   0xd   : > { %s1796_s22 = scalar_select %p1491_p6, 1, 0 }
   0xe   : > { %p1496_p8 = pnand %p988_p5, %p142_p7  ;;  %s154_s25 = sshll.u32 %s1412_s24, 4  ;;  %s1500_s25 = int_to_ptr.vmem [resolvable:$true] %s154_s25 }
   0xf   : > { %s1413_s27 = smov [#allocation7]   ;;  %s1222_s5 = scalar_lea.hbm %s1788_s1, 512 }
  0x10   : > { %s1797_s23 = scalar_select %p1496_p8, 1, 0 }
  0x11   : > { %p1121_p9 = pneg %p1496_p8  ;;  %s167_s28 = sshll.u32 %s1413_s27, 4  ;;  %s1511_s28 = int_to_ptr.vmem [resolvable:$true] %s167_s28 }
  0x12   : > { %p1223_p12 = scmp.ne.s32.totalorder %s1788_s1, %s1222_s5  ;;  %p1229_p5 = scmp.lt.u32.totalorder %s1222_s5, %s1788_s1 }
  0x13   : > { %p1507_p11 = pnand %p1121_p9, %p1792_p1 }
  0x15   : > { %p1521_p13 = pneg %p1507_p11 }
  0x17   : > { %p1225_p0 = pnand %p1521_p13, %p1223_p12 }
  0x19   : > { %p1226_p3 = pneg %p1225_p0 }
  0x1b   : > { %p1231_p7 = pnand %p1229_p5, %p1226_p3 }
  0x1d   : > { %1234 = shalt.err (!%p1231_p7)
}
  0x1e   : > { %s1235_s11 = scalar_lea.vmem %s1500_s25, 512  ;;  %p1243_p2 = scmp.lt.s32.totalorder %s1500_s25, %s1500_s25 }
  0x1f   : > { %p1236_p9 = scmp.ne.s32.totalorder %s1500_s25, %s1235_s11  ;;  %p1244_p6 = scmp.lt.s32.totalorder %s1235_s11, %s1235_s11 }
  0x21   : > { %p1238_p10 = pnand %p1236_p9, %p1521_p13  ;;  %p1245_p12 = por %p1244_p6, %p1243_p2 }
  0x23   : > { %p1239_p1 = pneg %p1238_p10 }
  0x25   : > { %p1246_p0 = pnand %p1245_p12, %p1239_p1 }
  0x27   : > { %1249 = shalt.err (!%p1246_p0)
}
  0x28   : > { %s1414_s12 = smov 128   ;;  %s1415_s13 = smov 8  }
  0x29   : > { %1124 = dma.hbm_to_vmem [thread:$0]  (!%p1507_p11), %s1788_s1, 512, %s1500_s25, [#allocation6], %s1414_s12, %s1414_s12, %s1415_s13  }
  0x2a   : > { %s1250_s29 = scalar_lea.hbm %s1789_s2, 512 }
  0x2b   : > { %p1251_p2 = scmp.ne.s32.totalorder %s1789_s2, %s1250_s29  ;;  %p1257_p10 = scmp.lt.u32.totalorder %s1250_s29, %s1789_s2 }
  0x2d   : > { %p1253_p1 = pnand %p1251_p2, %p1521_p13 }
  0x2f   : > { %p1254_p6 = pneg %p1253_p1 }
  0x31   : > { %p1259_p3 = pnand %p1257_p10, %p1254_p6 }
  0x33   : > { %1262 = shalt.err (!%p1259_p3)
}
  0x34   : > { %s1263_s25 = scalar_lea.vmem %s1511_s28, 512  ;;  %p1271_p12 = scmp.lt.s32.totalorder %s1511_s28, %s1511_s28 }
  0x35   : > { %p1264_p5 = scmp.ne.s32.totalorder %s1511_s28, %s1263_s25  ;;  %p1272_p0 = scmp.lt.s32.totalorder %s1263_s25, %s1263_s25 }
  0x37   : > { %p1266_p7 = pnand %p1264_p5, %p1521_p13  ;;  %p1273_p2 = por %p1272_p0, %p1271_p12 }
  0x39   : > { %p1267_p9 = pneg %p1266_p7 }
  0x3b   : > { %p1274_p1 = pnand %p1273_p2, %p1267_p9 }
  0x3d   : > { %1277 = shalt.err (!%p1274_p1)
}
  0x3e   : > { %s1416_s9 = smov 64   ;;  %s1417_s10 = smov 4  }
  0x3f   : > { %1127 = dma.hbm_to_vmem [thread:$0]  (!%p1507_p11), %s1789_s2, 512, %s1511_s28, [#allocation6], %s1416_s9, %s1416_s9, %s1417_s10  }
  0x40   : > { %s1418_s13 = smov [#allocation8]   ;;  %s1566_s20 = sadd.s32 1, %s1410_s18  }
  0x41   : > { %s181_s14 = sshll.u32 %s1418_s13, 4  ;;  %s1278_s29 = scalar_lea.hbm %s1790_s3, 16  ;;  %s182_s14 = int_to_ptr.vmem [resolvable:$true] %s181_s14 }
  0x42   : > { %p1279_p6 = scmp.ne.s32.totalorder %s1790_s3, %s1278_s29  ;;  %p1285_p5 = scmp.lt.u32.totalorder %s1278_s29, %s1790_s3 }
  0x44   : > { %p1281_p10 = pnand %p1279_p6, %p1521_p13 }
  0x46   : > { %p1282_p3 = pneg %p1281_p10 }
  0x48   : > { %p1287_p7 = pnand %p1285_p5, %p1282_p3 }
  0x4a   : > { %1290 = shalt.err (!%p1287_p7)
}
  0x4b   : > { %s1291_s28 = scalar_lea.vmem %s182_s14, 16  ;;  %s1298_s25 = scalar_lea.vmem %s182_s14, 32 }
  0x4c   : > { %p1292_p9 = scmp.ne.s32.totalorder %s182_s14, %s1291_s28  ;;  %p1299_p2 = scmp.lt.s32.totalorder %s182_s14, %s182_s14 }
  0x4d   : > { %p1300_p1 = scmp.lt.s32.totalorder %s1298_s25, %s1291_s28 }
  0x4e   : > { %p1294_p12 = pnand %p1292_p9, %p1521_p13 }
  0x4f   : > { %p1301_p4 = por %p1300_p1, %p1299_p2 }
  0x50   : > { %p1295_p0 = pneg %p1294_p12 }
  0x52   : > { %p1302_p8 = pnand %p1301_p4, %p1295_p0 }
  0x54   : > { %1305 = shalt.err (!%p1302_p8)
}
  0x55   : > { %1130 = dma.hbm_to_vmem [thread:$0]  (!%p1507_p11), %s1790_s3, 16, %s182_s14, [#allocation9]  }
  0x56   : > { %s26_s8 = ssub.s32 %s1410_s18, %s1566_s20  ;;  %s29_s11 = sadd.s32 1, %s1406_s17 }
  0x57   : > { %p27_p4 = scmp.eq.s32.totalorder %s26_s8, 0  ;;  %p36_p8 = scmp.ne.s32.totalorder %s1406_s17, %s1402_s16 }
  0x58   : > { %p37_p13 = scmp.eq.s32.totalorder %s1410_s18, 0  ;;  %p1142_p6 = scmp.lt.s32.totalorder %s1410_s18, 2 }
  0x59   : > { %s1594_s26 = scalar_select %p27_p4, %s1406_s17, %s29_s11  }
  0x5a   : > { %p38_p10 = por %p37_p13, %p36_p8  ;;  %p1800_p3 = scmp.eq.s32.totalorder %s1477_s19, 1 }
  0x5b   : > { %s192_s13 = sand.u32 1, %s1406_s17   ;;  %s994_s24 = sshll.u32 %s1410_s18, 7 }
  0x5c   : > { %p1598_p5 = por %p1800_p3, %p36_p8  ;;  %s993_s27 = sshll.u32 %s192_s13, 3 }
  0x5d   : > { %s1607_s14 = scalar_lea.hbm %s1787_s0, %s994_s24  ;;  %s196_s5 = scalar_lea.vmem [#allocation2], %s993_s27 }
  0x5e   : > { %s203_s6 = sshll.u32 %s196_s5, 4  ;;  %p1609_p11 = pnand %p1142_p6, %p38_p10  ;;  %s1613_s6 = int_to_ptr.vmem [resolvable:$true] %s203_s6 }
  0x5f   : > { %s193_s28 = scalar_lea.sflag [#allocation3], %s192_s13  ;;  %s1306_s25 = scalar_lea.hbm %s1607_s14, 128 }
  0x60   : > { %p1307_p7 = scmp.ne.s32.totalorder %s1607_s14, %s1306_s25  ;;  %p1308_p9 = pneg %p1609_p11 }
  0x61   : > { %s1311_s8 = scalar_lea.hbm %s1787_s0, 256  ;;  %p1312_p2 = scmp.lt.u32.totalorder %s1607_s14, %s1787_s0 }
  0x62   : > { %p1309_p12 = pnand %p1308_p9, %p1307_p7  ;;  %p1313_p1 = scmp.lt.u32.totalorder %s1311_s8, %s1306_s25 }
  0x63   : > { %p1315_p8 = scmp.lt.u32.totalorder %s1306_s25, %s1607_s14 }
  0x64   : > { %p1310_p0 = pneg %p1309_p12  ;;  %p1314_p4 = por %p1313_p1, %p1312_p2 }
  0x66   : > { %p1316_p13 = por %p1315_p8, %p1314_p4 }
  0x68   : > { %p1317_p6 = pnand %p1316_p13, %p1310_p0 }
  0x6a   : > { %1320 = shalt.err (!%p1317_p6)
}
  0x6b   : > { %s1321_s13 = scalar_lea.vmem %s1613_s6, 128  ;;  %s1419_s27 = smov [#allocation2]  }
  0x6c   : > { %p1322_p10 = scmp.ne.s32.totalorder %s1613_s6, %s1321_s13  ;;  %s1326_s29 = sshll.u32 %s1419_s27, 4  ;;  %s1327_s29 = int_to_ptr.vmem [resolvable:$false] %s1326_s29 }
  0x6d   : > { %s1328_s30 = scalar_lea.vmem %s1327_s29, 256  ;;  %p1329_p12 = scmp.lt.s32.totalorder %s1613_s6, %s1327_s29 }
  0x6e   : > { %p1324_p3 = pnand %p1322_p10, %p1308_p9  ;;  %p1330_p2 = scmp.lt.s32.totalorder %s1328_s30, %s1321_s13 }
  0x70   : > { %p1325_p7 = pneg %p1324_p3  ;;  %p1331_p1 = por %p1330_p2, %p1329_p12 }
  0x72   : > { %p1332_p4 = pnand %p1331_p1, %p1325_p7 }
  0x74   : > { %1335 = shalt.err (!%p1332_p4)
}
  0x75   : > { %1134 = dma.hbm_to_vmem [thread:$0]  (!%p1609_p11), %s1607_s14, 128, %s1613_s6, %s193_s28  }
  0x76   : > { %p1803_p0 = scmp.ne.s32.totalorder %s1797_s23, 0 }
  0x77   : > { %s1643_s5 = sand.u32 (!%p1803_p0), 1, %s1402_s16   ;;  %p1804_p9 = scmp.ne.s32.totalorder (!%p1803_p0), %s1795_s21, 0 }
  0x78   : > { %212 = sbr.rel (%p1803_p0) target bundleno = 1628 (0x65c), region = 36  ;;  %s996_s25 = sshll.u32 (!%p1803_p0), %s1643_s5, 3 }
  0x79   : > { %s215_s9 = scalar_lea.sflag (!%p1803_p0), [#allocation3], %s1643_s5  ;;  %s218_s10 = scalar_lea.vmem (!%p1803_p0), [#allocation2], %s996_s25 }
  0x7f   : > { %1381 = dma.done.wait (%p1804_p9), %s215_s9, 128  }
  0x80   : > { %1383 = vsyncadd (%p1804_p9), %s215_s9, 4294967168  ;;  %p1805_p11 = scmp.eq.s32.totalorder %s1477_s19, 0 }
  0x82   : > { %1385 = dma.done.wait (%p1805_p11), [#allocation6], 1024   ;;  %p1806_p8 = pmov %p1805_p11 }
  0x84   : > { %1387 = vsyncadd (%p1806_p8), [#allocation6], 4294966272  ;;  %p1807_p13 = pmov %p1806_p8 }
  0x85   : > { %p1808_p6 = pmov %p1806_p8 }
  0x86   : > { %1389 = dma.done.wait (%p1807_p13), [#allocation9], 16  }
  0x87   : > { %1391 = vsyncadd (%p1808_p6), [#allocation9], 4294967280  ;;  %v1420_v0 = vmov 0   ;;  %v1196_v1 = vld [vmem:[#allocation5 + $0x4] ss:$8 sps:$4 sm:$0xff]   ;;  %v256_v5 = vld [vmem:[%s218_s10] sm:$0xff] }
  0x88   : > { %318 = vmatprep.mubr.bf16.mxu0 %v1420_v0  ;;  %v1198_v2 = vld [vmem:[#allocation5] ss:$8 sps:$4 sm:$0xff]   ;;  %286 = vmatprep.subr.bf16.mxu0 %v1196_v1  ;;  %v1199_v3 = vld [vmem:[#allocation5 + $0x14] ss:$8 sps:$4 sm:$0xff]   ;;  %v1201_v4 = vld [vmem:[#allocation5 + $0x10] ss:$8 sps:$4 sm:$0xff]   ;;  %v257_v6 = vpack.c.bf16 %v256_v5, %v256_v5 }
  0x89   : > { %287 = vmatpush1.bf16.msra.mxu0 %v1198_v2  ;;  %vm282_vm0 = vcmask 261120   ;;  %v1421_v7 = vmov 0.0   ;;  %vm1422_vm1 = vmmov 0   ;;  %vm395_vm2 = vcmask 1043456   ;;  %s1423_s21 = smov 112   ;;  %s1424_s23 = smov 64  }
  0x8a   : > { %288 = vmatprep.subr.bf16.mxu0 %v1199_v3  ;;  %1045 = vmatprep.subr.bf16.mxu1 %v1421_v7  ;;  %s1425_s14 = smov 32   ;;  %s1426_s6 = smov 48   ;;  %vm332_vm3 = vcmask 130048   ;;  %vm379_vm4 = vcmask 64512   ;;  %vm788_vm5 = vcmask 392192   ;;  %vm830_vm6 = vcmask 523264  }
  0x8b   : > { %1047 = vmatprep.mubr.msk.bf16.mxu1 %vm1422_vm1, %v1421_v7  ;;  %s1427_s7 = smov 16   ;;  %s1428_s28 = smov 96  }
  0x8c   : > { %s1429_s8 = smov 80   ;;  %s1021_s11 = sshll.u32 %s1477_s19, 7 }
  0x8d   : > { %289 = vmatpush1.bf16.msra.mxu0 %v1201_v4  ;;  %s254_s24 = scalar_lea.vmem [#allocation10], %s996_s25  ;;  %s1742_s30 = scalar_lea.hbm %s1791_s4, %s1021_s11 }
  0x8e   : > { %1051 = vmatprep.subr.bf16.mxu0 %v1421_v7  ;;  %s888_s13 = sshll.u32 %s254_s24, 4  ;;  %s875_s19 = scalar_lea.sflag [#allocation4], %s1643_s5  ;;  %s1744_s13 = int_to_ptr.vmem [resolvable:$true] %s888_s13 }
  0x8f   : > { %s1336_s25 = scalar_lea.vmem %s1744_s13, 128  ;;  %s1430_s9 = smov [#allocation10]  }
  0x90   : > { %1005 = vmatmul.mubr.msk.bf16.vlgmr.msra.gmra.mrb[0].mxu0 %vm282_vm0, %v257_v6  ;;  %p1337_p10 = scmp.ne.s32.totalorder %s1744_s13, %s1336_s25  ;;  %s1340_s10 = sshll.u32 %s1430_s9, 4  ;;  %s1341_s10 = int_to_ptr.vmem [resolvable:$false] %s1340_s10 }
  0x91   : > { %1053 = vmatprep.mubr.msk.bf16.mxu0 %vm1422_vm1, %v1421_v7  ;;  %p1343_p12 = scmp.lt.s32.totalorder %s1744_s13, %s1341_s10 }
  0x92   : > { %p1338_p3 = pnand %p1337_p10, %p1598_p5 }
  0x94   : > { %p1339_p7 = pneg %p1338_p3 }
 0x163   : > { %v320_v8 = vpop.f32.mrb[0].mxu0 }
 0x164   : > { %v327_v9 = vpack.c.bf16 %v320_v8, %v320_v8  ;;  %v322_v10 = vpop.f32.mrb[1].mxu0 }
 0x165   : > { %v1668_v11 = vpack.c.bf16 %v322_v10, %v322_v10  ;;  %v324_v12 = vpop.f32.mrb[2].mxu0 }
 0x166   : > { %440 = vrot.lane.b32.xlu1 %v327_v9, %s1423_s21  ;;  %330 = vrot.lane.b32.xlu0 %v327_v9, %s1424_s23  ;;  %v325_v13 = vpop.f32.mrb[3].mxu0 }
 0x167   : > { %v397_v14 = vsel %vm395_vm2, %v1668_v11, 0 }
 0x168   : > { %1052 = vmatpush3.bf16.msra.mxu0 %v397_v14 }
 0x169   : > { %1063 = vmatprep.subr.bf16.mxu0 %v1421_v7 }
 0x16a   : > { %554 = vrot.lane.b32.xlu1 %v327_v9, %s1425_s14  ;;  %442 = vrot.lane.b32.xlu0 %v327_v9, %s1426_s6 }
 0x16e   : > { %665 = vrot.lane.b32.xlu1 %v327_v9, %s1427_s7  ;;  %552 = vrot.lane.b32.xlu0 %v327_v9, %s1428_s28 }
 0x172   : > { %663 = vrot.lane.b32.xlu0 %v327_v9, %s1429_s8 }
 0x1d8   : > { %v331_v15 = vpop.permute.xlu0 %330  ;;  %v441_v18 = vpop.permute.xlu1 %440 }
 0x1d9   : > { %v337_v16 = vsel %vm332_vm3, %v331_v15, 0 }
 0x1da   : > { %1046 = vmatpush3.bf16.xpose.msra.mxu1 %v337_v16 }
 0x1db   : > { %1057 = vmatprep.subr.bf16.mxu1 %v1421_v7 }
 0x1dc   : > { %v443_v17 = vpop.permute.xlu0 %442  ;;  %v555_v20 = vpop.permute.xlu1 %554 }
 0x1dd   : > { %v448_v19 = vsel %vm332_vm3, %v443_v17, 0  ;;  %v560_v21 = vsel %vm332_vm3, %v555_v20, 0 }
 0x1e0   : > { %v666_v22 = vpop.permute.xlu1 %665  ;;  %v553_v23 = vpop.permute.xlu0 %552 }
 0x1e1   : > { %1048 = vmatmul.mubr.msk.bf16.vlgmr.msra.gmra.mrb[0].mxu1 %vm332_vm3, %v327_v9  ;;  %v671_v24 = vsel %vm332_vm3, %v666_v22, 0 }
 0x1e2   : > { %1058 = vmatpush3.bf16.xpose.msra.mxu1 %v448_v19  ;;  %1059 = vmatprep.mubr.msk.bf16.mxu1 %vm1422_vm1, %v1421_v7 }
 0x1e3   : > { %1069 = vmatprep.subr.bf16.mxu1 %v1421_v7 }
 0x1e4   : > { %v664_v25 = vpop.permute.xlu0 %663 }
 0x1e9   : > { %1060 = vmatmul.mubr.msk.bf16.vlgmr.msra.gmra.mrb[4].mxu1 %vm332_vm3, %v441_v18 }
 0x1ea   : > { %1070 = vmatpush3.bf16.xpose.msra.mxu1 %v560_v21  ;;  %1071 = vmatprep.mubr.msk.bf16.mxu1 %vm1422_vm1, %v1421_v7 }
 0x1eb   : > { %1081 = vmatprep.subr.bf16.mxu1 %v1421_v7 }
 0x1f1   : > { %1072 = vmatmul.mubr.msk.bf16.vlgmr.msra.gmra.mrb[8].mxu1 %vm332_vm3, %v553_v23 }
 0x1f2   : > { %1082 = vmatpush3.bf16.xpose.msra.mxu1 %v671_v24  ;;  %1083 = vmatprep.mubr.msk.bf16.mxu1 %vm1422_vm1, %v1421_v7 }
 0x1f3   : > { %1093 = vmatprep.subr.bf16.mxu1 %v1421_v7 }
 0x1f9   : > { %1084 = vmatmul.mubr.msk.bf16.vlgmr.msra.gmra.mrb[12].mxu1 %vm332_vm3, %v664_v25 }
 0x1fa   : > { %1101 = vmatprep.mubr.msk.bf16.mxu1 %vm1422_vm1, %v1421_v7 }
 0x2b4   : > { %v373_v26 = vpop.f32.mrb[0].mxu1 }
 0x2b5   : > { %v1049_v27 = vpop.f32.mrb[1].mxu1  ;;  %v380_v28 = vsel %vm379_vm4, %v373_v26, -inf }
 0x2b6   : > { %381 = vmax.xlane.f32.xlu1 %v380_v28  ;;  %v376_v29 = vpop.f32.mrb[2].mxu1 }
 0x2b7   : > { %v1050_v30 = vpop.f32.mrb[3].mxu1  ;;  %v1202_v29 = vld [vmem:[#allocation7] sm:$0xff]  }
 0x2b8   : > { %1094 = vmatpush3.bf16.msra.mxu1 %v1202_v29 }
 0x2b9   : > { %1095 = vmatprep.subr.bf16.mxu1 %v1421_v7 }
 0x2bc   : > { %v484_v31 = vpop.f32.mrb[4].mxu1 }
 0x2bd   : > { %v1061_v32 = vpop.f32.mrb[5].mxu1  ;;  %v490_v33 = vsel %vm379_vm4, %v484_v31, -inf }
 0x2be   : > { %491 = vmax.xlane.f32.xlu0 %v490_v33  ;;  %v487_v34 = vpop.f32.mrb[6].mxu1 }
 0x2bf   : > { %v1062_v35 = vpop.f32.mrb[7].mxu1 }
 0x2c4   : > { %v596_v36 = vpop.f32.mrb[8].mxu1 }
 0x2c5   : > { %v1073_v37 = vpop.f32.mrb[9].mxu1  ;;  %v602_v38 = vsel %vm379_vm4, %v596_v36, -inf }
 0x2c6   : > { %603 = vmax.xlane.f32.xlu0 %v602_v38  ;;  %v599_v39 = vpop.f32.mrb[10].mxu1  ;;  %v1205_v38 = vld [vmem:[#allocation7 + $0x18] sm:$0xff]  }
 0x2c7   : > { %v1074_v40 = vpop.f32.mrb[11].mxu1 }
 0x2cc   : > { %v707_v41 = vpop.f32.mrb[12].mxu1 }
 0x2cd   : > { %v1085_v42 = vpop.f32.mrb[13].mxu1  ;;  %v713_v43 = vsel %vm379_vm4, %v707_v41, -inf }
 0x2ce   : > { %714 = vmax.xlane.f32.xlu1 %v713_v43  ;;  %v710_v44 = vpop.f32.mrb[14].mxu1 }
 0x2cf   : > { %v1086_v45 = vpop.f32.mrb[15].mxu1 }
 0x343   : > { %v382_v46 = vpop.xlane.xlu1 %381 }
 0x344   : > { %v383_v47 = vsub.f32 %v373_v26, %v382_v46 }
 0x346   : > { %v384_v48 = vmul.f32 1.442695, %v383_v47 }
 0x348   : > { %1206 = vpow2.f32 %v384_v48 }
 0x34b   : > { %v492_v49 = vpop.xlane.xlu0 %491 }
 0x34c   : > { %v493_v50 = vsub.f32 %v484_v31, %v492_v49  ;;  %v1203_v31 = vld [vmem:[#allocation7 + $0x8] sm:$0xff]  }
 0x34d   : > { %1096 = vmatpush3.bf16.msra.mxu1 %v1203_v31 }
 0x34e   : > { %v494_v51 = vmul.f32 1.442695, %v493_v50  ;;  %1097 = vmatprep.subr.bf16.mxu1 %v1421_v7 }
 0x350   : > { %1208 = vpow2.f32 %v494_v51 }
 0x352   : > { %v1207_v52 = vpop.eup %1206 }
 0x353   : > { %v604_v53 = vpop.xlane.xlu0 %603  ;;  %v386_v54 = vsel %vm379_vm4, %v1207_v52, 0.0 }
 0x354   : > { %v605_v55 = vsub.f32 %v596_v36, %v604_v53  ;;  %387 = vadd.xlane.f32.xlu0 %v386_v54  ;;  %v1204_v36 = vld [vmem:[#allocation7 + $0x10] sm:$0xff]   ;;  %v1014_v54 = vld [vmem:[#allocation8] ss:$0 sm:$0xff] }
 0x355   : > { %1098 = vmatpush3.bf16.msra.mxu1 %v1204_v36 }
 0x356   : > { %v606_v56 = vmul.f32 1.442695, %v605_v55  ;;  %1099 = vmatprep.subr.bf16.mxu1 %v1421_v7 }
 0x358   : > { %1210 = vpow2.f32 %v606_v56 }
 0x359   : > { %1100 = vmatpush3.bf16.msra.mxu1 %v1205_v38 }
 0x35a   : > { %v1209_v57 = vpop.eup %1208 }
 0x35b   : > { %v496_v58 = vsel %vm379_vm4, %v1209_v57, 0.0  ;;  %v715_v61 = vpop.xlane.xlu1 %714 }
 0x35c   : > { %497 = vadd.xlane.f32.xlu1 %v496_v58  ;;  %v716_v62 = vsub.f32 %v707_v41, %v715_v61 }
 0x35e   : > { %v717_v63 = vmul.f32 1.442695, %v716_v62 }
 0x360   : > { %1212 = vpow2.f32 %v717_v63 }
 0x362   : > { %v1211_v59 = vpop.eup %1210 }
 0x363   : > { %v608_v60 = vsel %vm379_vm4, %v1211_v59, 0.0 }
 0x364   : > { %609 = vadd.xlane.f32.xlu0 %v608_v60 }
 0x36a   : > { %v1213_v0 = vpop.eup %1212 }
 0x36b   : > { %v719_v1 = vsel %vm379_vm4, %v1213_v0, 0.0 }
 0x36d   : > { %614 = vrot.lane.b32.xlu1 %v1668_v11, %s1428_s28 }
 0x37a   : > { %503 = vrot.lane.b32.xlu0 %v1668_v11, %s1423_s21  ;;  %s1342_s21 = scalar_lea.vmem %s1341_s10, 256 }
 0x37b   : > { %p1344_p2 = scmp.lt.s32.totalorder %s1342_s21, %s1336_s25 }
 0x37d   : > { %p1345_p1 = por %p1344_p2, %p1343_p12 }
 0x37f   : > { %p1346_p4 = pnand %p1345_p1, %p1339_p7 }
 0x391   : > { %720 = vadd.xlane.f32.xlu1 %v719_v1 }
 0x3a2   : > { %725 = vrot.lane.b32.xlu1 %v1668_v11, %s1429_s8 }
 0x3e1   : > { %v388_v2 = vpop.xlane.xlu0 %387 }
 0x3e2   : > { %1214 = vrcp.f32 %v388_v2 }
 0x3e9   : > { %v498_v3 = vpop.xlane.xlu1 %497 }
 0x3ea   : > { %1216 = vrcp.f32 %v498_v3 }
 0x3ec   : > { %v1215_v4 = vpop.eup %1214 }
 0x3ed   : > { %v390_v5 = vmul.f32 %v1215_v4, %v1207_v52  ;;  %v615_v11 = vpop.permute.xlu1 %614 }
 0x3ee   : > { %v620_v15 = vsel %vm395_vm2, %v615_v11, 0 }
 0x3ef   : > { %v391_v6 = vpack.c.bf16 %v390_v5, %v390_v5 }
 0x3f1   : > { %v610_v8 = vpop.xlane.xlu0 %609  ;;  %1054 = vmatmul.mubr.msk.bf16.vlgmr.msra.gmra.mrb[4].mxu0 %vm379_vm4, %v391_v6 }
 0x3f2   : > { %1218 = vrcp.f32 %v610_v8  ;;  %1065 = vmatprep.mubr.msk.bf16.mxu0 %vm1422_vm1, %v1421_v7 }
 0x3f4   : > { %v1217_v9 = vpop.eup %1216 }
 0x3f5   : > { %v500_v10 = vmul.f32 %v1217_v9, %v1209_v57  ;;  %v504_v12 = vpop.permute.xlu0 %503 }
 0x3f6   : > { %v509_v13 = vsel %vm395_vm2, %v504_v12, 0 }
 0x3f7   : > { %1064 = vmatpush3.bf16.msra.mxu0 %v509_v13  ;;  %v501_v14 = vpack.c.bf16 %v500_v10, %v500_v10 }
 0x3f8   : > { %1075 = vmatprep.subr.bf16.mxu0 %v1421_v7 }
 0x3fa   : > { %1066 = vmatmul.mubr.msk.bf16.vlgmr.msra.gmra.mrb[8].mxu0 %vm379_vm4, %v501_v14 }
 0x3fb   : > { %1076 = vmatpush3.bf16.msra.mxu0 %v620_v15  ;;  %1077 = vmatprep.mubr.msk.bf16.mxu0 %vm1422_vm1, %v1421_v7 }
 0x3fc   : > { %v1219_v16 = vpop.eup %1218  ;;  %1087 = vmatprep.subr.bf16.mxu0 %v1421_v7 }
 0x3fd   : > { %v612_v17 = vmul.f32 %v1219_v16, %v1211_v59 }
 0x3ff   : > { %v613_v18 = vpack.c.bf16 %v612_v17, %v612_v17 }
 0x402   : > { %1078 = vmatmul.mubr.msk.bf16.vlgmr.msra.gmra.mrb[12].mxu0 %vm379_vm4, %v613_v18 }
 0x403   : > { %1089 = vmatprep.mubr.msk.bf16.mxu0 %vm1422_vm1, %v1421_v7 }
 0x41e   : > { %v721_v19 = vpop.xlane.xlu1 %720 }
 0x41f   : > { %1220 = vrcp.f32 %v721_v19 }
 0x422   : > { %v726_v20 = vpop.permute.xlu1 %725 }
 0x423   : > { %v731_v21 = vsel %vm395_vm2, %v726_v20, 0 }
 0x424   : > { %1088 = vmatpush3.bf16.msra.mxu0 %v731_v21 }
 0x429   : > { %v1221_v22 = vpop.eup %1220 }
 0x42a   : > { %v723_v23 = vmul.f32 %v1221_v22, %v1213_v0 }
 0x42c   : > { %v724_v24 = vpack.c.bf16 %v723_v23, %v723_v23 }
 0x42e   : > { %1090 = vmatmul.mubr.msk.bf16.vlgmr.msra.gmra.mrb[16].mxu0 %vm379_vm4, %v724_v24 }
 0x4c4   : > { %v433_v25 = vpop.f32.mrb[4].mxu0 }
 0x4c5   : > { %v1055_v26 = vpop.f32.mrb[5].mxu0  ;;  %v439_v49 = vpack.c.bf16 %v433_v25, %v433_v25 }
 0x4c6   : > { %v436_v27 = vpop.f32.mrb[6].mxu0 }
 0x4c7   : > { %v1056_v28 = vpop.f32.mrb[7].mxu0 }
 0x4cd   : > { %v545_v30 = vpop.f32.mrb[8].mxu0 }
 0x4ce   : > { %v551_v32 = vpack.c.bf16 %v545_v30, %v545_v30  ;;  %v1067_v33 = vpop.f32.mrb[9].mxu0 }
 0x4cf   : > { %v548_v34 = vpop.f32.mrb[10].mxu0 }
 0x4d0   : > { %775 = vrot.lane.b32.xlu0 %v551_v32, %s1427_s7  ;;  %v1068_v35 = vpop.f32.mrb[11].mxu0 }
 0x4d5   : > { %v656_v37 = vpop.f32.mrb[12].mxu0 }
 0x4d6   : > { %v662_v39 = vpack.c.bf16 %v656_v37, %v656_v37  ;;  %v1079_v40 = vpop.f32.mrb[13].mxu0 }
 0x4d7   : > { %v659_v41 = vpop.f32.mrb[14].mxu0 }
 0x4d8   : > { %778 = vrot.lane.b32.xlu1 %v662_v39, %s1425_s14  ;;  %v1080_v42 = vpop.f32.mrb[15].mxu0 }
 0x501   : > { %v767_v43 = vpop.f32.mrb[16].mxu0 }
 0x502   : > { %v773_v44 = vpack.c.bf16 %v767_v43, %v767_v43  ;;  %v1091_v45 = vpop.f32.mrb[17].mxu0 }
 0x503   : > { %v770_v46 = vpop.f32.mrb[18].mxu0 }
 0x504   : > { %781 = vrot.lane.b32.xlu0 %v773_v44, %s1426_s6  ;;  %v1092_v47 = vpop.f32.mrb[19].mxu0 }
 0x542   : > { %v776_v48 = vpop.permute.xlu0 %775 }
 0x543   : > { %v785_v7 = vsel %vm332_vm3, %v439_v49, %v776_v48 }
 0x54a   : > { %v779_v50 = vpop.permute.xlu1 %778 }
 0x54b   : > { %v787_v51 = vsel %vm282_vm0, %v785_v7, %v779_v50 }
 0x576   : > { %v782_v52 = vpop.permute.xlu0 %781 }
 0x577   : > { %v790_v53 = vsel %vm788_vm5, %v787_v51, %v782_v52 }
 0x578   : > { %1102 = vmatmul.mubr.msk.bf16.vlgmr.msra.gmra.mrb[16].mxu1 %vm830_vm6, %v790_v53 }
 0x64b   : > { %v867_v55 = vpop.f32.mrb[16].mxu1 }
 0x64c   : > { %v868_v56 = vadd.f32 %v1014_v54, %v867_v55  ;;  %v1103_v57 = vpop.f32.mrb[17].mxu1 }
 0x64d   : > { %v870_v58 = vpop.f32.mrb[18].mxu1 }
 0x64e   : > { %v1104_v59 = vpop.f32.mrb[19].mxu1  ;;  %873 = vst.msk [vmem:[%s254_s24] sm:$0xff] %vm282_vm0, %v868_v56 }
 0x64f   : > { %1349 = shalt.err (!%p1346_p4)
}
 0x650   : > { %s1350_s5 = scalar_lea.hbm %s1742_s30, 128  ;;  %s1354_s6 = scalar_lea.hbm %s1791_s4, 256 }
 0x651   : > { %p1351_p0 = scmp.ne.s32.totalorder %s1742_s30, %s1350_s5  ;;  %p1355_p8 = scmp.lt.u32.totalorder %s1742_s30, %s1791_s4 }
 0x652   : > { %p1356_p13 = scmp.lt.u32.totalorder %s1354_s6, %s1350_s5  ;;  %p1358_p10 = scmp.lt.u32.totalorder %s1350_s5, %s1742_s30 }
 0x653   : > { %p1352_p9 = pnand %p1351_p0, %p1598_p5 }
 0x654   : > { %p1357_p6 = por %p1356_p13, %p1355_p8 }
 0x655   : > { %p1353_p11 = pneg %p1352_p9 }
 0x656   : > { %p1359_p3 = por %p1358_p10, %p1357_p6 }
 0x658   : > { %p1360_p7 = pnand %p1359_p3, %p1353_p11 }
 0x65a   : > { %1363 = shalt.err (!%p1360_p7)
}
 0x65b   : > { %1119 = dma.vmem_to_hbm [thread:$0]  (%p1598_p5), %s1744_s13, 128, %s1742_s30, %s875_s19  }
 0x65c PF: > { %s900_s8 = sand.u32 1, %s1398_s15   ;;  %p1809_p12 = scmp.ne.s32.totalorder %s1796_s22, 0 }
 0x65d   : > { %p1810_p2 = scmp.ge.s32.totalorder %s1410_s18, 2  ;;  %s901_s11 = scalar_lea.sflag [#allocation4], %s900_s8 }
 0x65f   : > { %p1136_p1 = pnand %p1810_p2, %p1809_p12 }
 0x661   : > { %1393 = dma.done.wait (!%p1136_p1), %s901_s11, 128  }
 0x662   : > { %1395 = vsyncadd (!%p1136_p1), %s901_s11, 4294967168  ;;  %p19_p4 = scmp.ge.s32.totalorder %s1566_s20, 4   ;;  %s1811_s15 = smov %s1402_s16 }
 0x663   : > { %s1812_s16 = smov %s1406_s17  ;;  %s1813_s17 = smov %s1594_s26 }
 0x664   : > { %s1814_s18 = smov %s1566_s20  ;;  %21 = sbr.rel (!%p19_p4) target bundleno = 7 (0x7), region = 93 }
 0x66b   :  { %906 = vsyncpa [#allocation3], 1 }
 0x66c   :  { %908 = vsyncpa [#allocation3 + $0x1], 1 }
 0x66d   :  { %909 = vsyncpa [#allocation6], 1 }
 0x66e   :  { %910 = vsyncpa [#allocation9], 1 }
 0x66f   :  { %911 = vsyncpa [#allocation4], 1 }
 0x670   :  { %913 = vsyncpa [#allocation4 + $0x1], 1 }

</bundles_post_ra>
